<compile_context>
chip_gen: v6e
topology: v6e:2x2x1
jax: 0.10.0
libtpu: 0.0.40
codegen_flags: <defaults>
</compile_context>

<pallas_src>
import functools

import jax
import jax.numpy as jnp
from jax.experimental import pallas as pl
from jax.experimental.pallas import tpu as pltpu

BN_EPS = 1e-5
GRAPHS_PER_STEP = 4  # GB: graphs packed along lanes per grid step


def _conv_kernel(x_ref, a_ref, wcat_ref, bias_ref, bres_ref, y_ref, stats_ref,
                 *, n_nodes, out_feats, gb):
    """Fused RelGraphConv(basis) + bias + ReLU + residual for GB graphs.

    x_ref    : (GB*N, in)      bf16   node feats of the GB graphs of this step
    a_ref    : (GB*N, 2N)      bf16   rows g*N:(g+1)*N hold [A0_g | A1_g]
    wcat_ref : (in, 3*out)     bf16   [V0 | V1 | W_res]
    bias_ref, bres_ref : (1, out) f32
    y_ref    : (N, GB*out)     f32    graph g's output in lanes g*out:(g+1)*out
    stats_ref: (1, 2, GB*out)  f32    per-graph column sum / sum-of-squares
    """
    F = out_feats
    N = n_nodes

    # One MXU push for all three weight matmuls of all GB graphs.
    h = jnp.dot(x_ref[...], wcat_ref[...],
                preferred_element_type=jnp.float32)              # (GB*N, 3F) f32
    a = a_ref[...]                                               # (GB*N, 2N) bf16

    # Hoisted (1, F) broadcasts (JAX does not CSE broadcast_in_dim).
    bias_b = jnp.broadcast_to(bias_ref[...], (N, F))
    bres_b = jnp.broadcast_to(bres_ref[...], (N, F))

    cols = []
    for g in range(gb):                                          # static, unrolled
        hg = h[g * N:(g + 1) * N]                                # (N, 3F)
        # 2N-wide (=128) contraction: [A0_g | A1_g] @ [H0_g ; H1_g]
        h_stack = jnp.concatenate([hg[:, :F], hg[:, F:2 * F]],
                                  axis=0).astype(jnp.bfloat16)   # (2N, F)
        agg = jnp.dot(a[g * N:(g + 1) * N], h_stack,
                      preferred_element_type=jnp.float32)        # (N, F)
        agg = jnp.maximum(agg + bias_b, 0.0)                     # conv bias + ReLU
        res = jnp.maximum(hg[:, 2 * F:] + bres_b, 0.0)           # residual ReLU
        cols.append(agg + res)

    y = jnp.concatenate(cols, axis=-1)                           # (N, GB*F) lane-dense
    y_ref[...] = y

    # One-pass BatchNorm statistics (finalized outside once all steps are done).
    s1 = jnp.sum(y, axis=0, keepdims=True)                       # (1, GB*F)
    s2 = jnp.sum(y * y, axis=0, keepdims=True)
    stats_ref[...] = jnp.concatenate([s1, s2], axis=0)[None]     # (1, 2, GB*F)


def _bn_apply_kernel(y_ref, scale_ref, shift_ref, out_ref):
    """y * scale + shift  (scale/shift precomputed from global batch stats)."""
    out_ref[...] = y_ref[...] * scale_ref[...] + shift_ref[...]


@jax.jit
def rgcn_layer_forward(x, a_cat, v_bases, bias, w_res, b_res, gamma, beta):
    """x: (G*N, in) f32; a_cat: (G*N, 2N) f32 (row block g = [A0_g | A1_g]);
    v_bases: (2, in, out); bias/b_res/gamma/beta: (1, out); w_res: (in, out)."""
    in_feats = x.shape[1]
    two_n = a_cat.shape[1]
    n_nodes = two_n // 2
    total = x.shape[0]
    g_total = total // n_nodes
    out_feats = v_bases.shape[2]
    gb = GRAPHS_PER_STEP
    assert g_total % gb == 0, "number of graphs must be a multiple of GRAPHS_PER_STEP"
    steps = g_total // gb

    # Fused weight [V0 | V1 | W_res]; bf16 MXU operands, halved DMA for A.
    w_cat = jnp.concatenate([v_bases[0], v_bases[1], w_res], axis=1).astype(jnp.bfloat16)
    x_b = x.astype(jnp.bfloat16)
    a_b = a_cat.astype(jnp.bfloat16)

    kernel1 = functools.partial(_conv_kernel, n_nodes=n_nodes,
                                out_feats=out_feats, gb=gb)
    y_packed, stats = pl.pallas_call(
        kernel1,
        out_shape=(
            jax.ShapeDtypeStruct((steps * n_nodes, gb * out_feats), jnp.float32),
            jax.ShapeDtypeStruct((steps, 2, gb * out_feats), jnp.float32),
        ),
        grid=(steps,),
        in_specs=[
            pl.BlockSpec((gb * n_nodes, in_feats), lambda s: (s, 0)),
            pl.BlockSpec((gb * n_nodes, two_n), lambda s: (s, 0)),
            pl.BlockSpec((in_feats, 3 * out_feats), lambda s: (0, 0)),
            pl.BlockSpec((1, out_feats), lambda s: (0, 0)),
            pl.BlockSpec((1, out_feats), lambda s: (0, 0)),
        ],
        out_specs=[
            pl.BlockSpec((n_nodes, gb * out_feats), lambda s: (s, 0)),
            pl.BlockSpec((1, 2, gb * out_feats), lambda s: (s, 0, 0)),
        ],
        compiler_params=pltpu.CompilerParams(
            dimension_semantics=("parallel",)),
    )(x_b, a_b, w_cat, bias, b_res)

    # Finalize BatchNorm stats over ALL nodes of the batched graph (tiny, in XLA).
    n_tot = jnp.float32(total)
    st = stats.reshape(steps, 2, gb, out_feats)
    sums = st[:, 0].sum(axis=(0, 1))                               # (F,)
    sumsq = st[:, 1].sum(axis=(0, 1))
    mean = sums / n_tot
    var = jnp.maximum(sumsq / n_tot - mean * mean, 0.0)            # clamp >= 0
    scale = gamma.reshape(-1) * jax.lax.rsqrt(var + BN_EPS)
    shift = beta.reshape(-1) - mean * scale
    scale_p = jnp.tile(scale, gb).reshape(1, gb * out_feats)
    shift_p = jnp.tile(shift, gb).reshape(1, gb * out_feats)

    out_packed = pl.pallas_call(
        _bn_apply_kernel,
        out_shape=jax.ShapeDtypeStruct((steps * n_nodes, gb * out_feats), jnp.float32),
        grid=(steps,),
        in_specs=[
            pl.BlockSpec((n_nodes, gb * out_feats), lambda s: (s, 0)),
            pl.BlockSpec((1, gb * out_feats), lambda s: (0, 0)),
            pl.BlockSpec((1, gb * out_feats), lambda s: (0, 0)),
        ],
        out_specs=pl.BlockSpec((n_nodes, gb * out_feats), lambda s: (s, 0)),
        compiler_params=pltpu.CompilerParams(
            dimension_semantics=("parallel",)),
    )(y_packed, scale_p, shift_p)

    # Unpack the lane-dense (graphs along lanes) layout -> (G*N, out).
    out = out_packed.reshape(steps, n_nodes, gb, out_feats)
    out = out.transpose(0, 2, 1, 3).reshape(total, out_feats)
    return out


if __name__ == "__main__":
    key = jax.random.PRNGKey(0)
    keys = jax.random.split(key, 12)

    # Batched graph: G molecules with N atoms each (BatchedDGLGraph semantics).
    G, N, E = 8, 64, 160
    in_feats, out_feats = 16, 32
    num_rels, num_bases = 65, 2

    x = jax.random.normal(keys[0], (G * N, in_feats), jnp.float32)
    src = jax.random.randint(keys[1], (G, E), 0, N)
    dst = jax.random.randint(keys[2], (G, E), 0, N)
    etype = jax.random.randint(keys[3], (G, E), 0, num_rels)
    # norm is None in the module's default forward -> no edge normalization.

    # Parameters (deterministic, synthetic).
    v_bases = 0.1 * jax.random.normal(keys[4], (num_bases, in_feats, out_feats), jnp.float32)
    w_comp = 0.1 * jax.random.normal(keys[5], (num_rels, num_bases), jnp.float32)
    bias = 0.1 * jax.random.normal(keys[6], (1, out_feats), jnp.float32)
    w_res = 0.1 * jax.random.normal(keys[7], (in_feats, out_feats), jnp.float32)
    b_res = 0.1 * jax.random.normal(keys[8], (1, out_feats), jnp.float32)
    gamma = jnp.ones((1, out_feats), jnp.float32)   # BatchNorm1d affine init
    beta = jnp.zeros((1, out_feats), jnp.float32)

    # Glue: fold edge lists + basis coefficients into dense per-graph, per-basis
    # aggregation matrices, stored with the bases concatenated along the
    # contraction dim:  a_cat[g*N + v, :] = [A0_g[v, :] | A1_g[v, :]].
    coef = w_comp[etype]                                           # (G, E, num_bases)
    g_idx = jnp.arange(G)[:, None]
    a_parts = []
    for b in range(num_bases):
        ab = jnp.zeros((G, N, N), jnp.float32).at[g_idx, dst, src].add(coef[..., b])
        a_parts.append(ab)
    a_cat = jnp.concatenate(a_parts, axis=-1).reshape(G * N, num_bases * N)

    out = rgcn_layer_forward(x, a_cat, v_bases, bias, w_res, b_res, gamma, beta)
    out = jax.block_until_ready(out)
    assert out.shape == (G * N, out_feats)

    # ---- Reference 1: bf16-matched math (verifies the kernels exactly). ----
    xb = x.astype(jnp.bfloat16)
    ab3 = a_cat.astype(jnp.bfloat16).reshape(G, N, 2 * N)
    wcatb = jnp.concatenate([v_bases[0], v_bases[1], w_res], axis=1).astype(jnp.bfloat16)
    h = jnp.dot(xb, wcatb, preferred_element_type=jnp.float32).reshape(G, N, 3 * out_feats)
    h_stack = jnp.concatenate([h[:, :, :out_feats], h[:, :, out_feats:2 * out_feats]],
                              axis=1).astype(jnp.bfloat16)         # (G, 2N, F)
    agg = jnp.einsum("gvk,gkf->gvf", ab3, h_stack,
                     preferred_element_type=jnp.float32)
    agg = jnp.maximum(agg + bias, 0.0)
    res = jnp.maximum(h[:, :, 2 * out_feats:] + b_res, 0.0)
    y = (agg + res).reshape(G * N, out_feats)
    mean = y.sum(0) / (G * N)
    var = jnp.maximum((y * y).sum(0) / (G * N) - mean * mean, 0.0)
    scale = gamma.reshape(-1) * jax.lax.rsqrt(var + BN_EPS)
    shift = beta.reshape(-1) - mean * scale
    ref_matched = y * scale + shift
    assert jnp.allclose(out, ref_matched, atol=5e-3, rtol=5e-3), \
        "mismatch vs bf16-matched reference"

    # ---- Reference 2: full-f32 module semantics (loose tol due to bf16 MXU ops). ----
    HI = jax.lax.Precision.HIGHEST
    x3 = x.reshape(G, N, in_feats)
    h0 = jnp.einsum("gni,io->gno", x3, v_bases[0], precision=HI)
    h1 = jnp.einsum("gni,io->gno", x3, v_bases[1], precision=HI)
    agg_f = (jnp.einsum("gvu,guo->gvo", a_parts[0], h0, precision=HI)
             + jnp.einsum("gvu,guo->gvo", a_parts[1], h1, precision=HI))
    agg_f = jnp.maximum(agg_f + bias, 0.0)
    res_f = jnp.maximum(jnp.einsum("gni,io->gno", x3, w_res, precision=HI) + b_res, 0.0)
    y_f = (agg_f + res_f).reshape(G * N, out_feats)
    mean_f = y_f.mean(0, keepdims=True)
    var_f = ((y_f - mean_f) ** 2).mean(0, keepdims=True)
    ref_f32 = (y_f - mean_f) / jnp.sqrt(var_f + BN_EPS) * gamma + beta
    assert jnp.allclose(out, ref_f32, atol=6e-2, rtol=6e-2), "mismatch vs f32 reference"

    print("KERNEL_OK")
</pallas_src>

<mosaic_0001>
module attributes {stable_mosaic.version = 11 : i64} {
  func.func @_conv_kernel(%arg0: i32, %arg1: memref<256x16xbf16, #tpu.memory_space<vmem>>, %arg2: memref<256x128xbf16, #tpu.memory_space<vmem>>, %arg3: memref<16x96xbf16, #tpu.memory_space<vmem>>, %arg4: memref<1x32xf32, #tpu.memory_space<vmem>>, %arg5: memref<1x32xf32, #tpu.memory_space<vmem>>, %arg6: memref<64x128xf32, #tpu.memory_space<vmem>>, %arg7: memref<1x2x128xf32, #tpu.memory_space<vmem>>) attributes {dimension_semantics = [#tpu.dimension_semantics<parallel>], iteration_bounds = array<i64: 2>, scalar_prefetch = 0 : i64, scratch_operands = 0 : i64, tpu.core_type = #tpu.core_type<tc>, window_params = [{transform_indices = @transform_0, window_bounds = array<i64: 256, 16>}, {transform_indices = @transform_1, window_bounds = array<i64: 256, 128>}, {pipeline_mode = #tpu.pipeline_mode<synchronous>, transform_indices = @transform_2, window_bounds = array<i64: 16, 96>}, {pipeline_mode = #tpu.pipeline_mode<synchronous>, transform_indices = @transform_3, window_bounds = array<i64: 1, 32>}, {pipeline_mode = #tpu.pipeline_mode<synchronous>, transform_indices = @transform_4, window_bounds = array<i64: 1, 32>}, {transform_indices = @transform_5, window_bounds = array<i64: 64, 128>}, {transform_indices = @transform_6, window_bounds = array<i64: 1, 2, 128>}]} {
    %c0 = arith.constant 0 : index
    %c0_0 = arith.constant 0 : index
    %0 = vector.load %arg1[%c0, %c0_0] : memref<256x16xbf16, #tpu.memory_space<vmem>>, vector<256x16xbf16>
    %c0_1 = arith.constant 0 : index
    %c0_2 = arith.constant 0 : index
    %1 = vector.load %arg3[%c0_1, %c0_2] : memref<16x96xbf16, #tpu.memory_space<vmem>>, vector<16x96xbf16>
    %cst = arith.constant dense<0.000000e+00> : vector<256x96xf32>
    %2 = tpu.matmul %0, %1, %cst {dimension_numbers = #tpu.dot_dimension_numbers<[1], [0], [0], [1], [0, 0, 1, 1], [], []>} : vector<256x16xbf16>, vector<16x96xbf16>, vector<256x96xf32> -> vector<256x96xf32>
    %c0_3 = arith.constant 0 : index
    %c0_4 = arith.constant 0 : index
    %3 = vector.load %arg2[%c0_3, %c0_4] : memref<256x128xbf16, #tpu.memory_space<vmem>>, vector<256x128xbf16>
    %c0_5 = arith.constant 0 : index
    %c0_6 = arith.constant 0 : index
    %4 = vector.load %arg4[%c0_5, %c0_6] : memref<1x32xf32, #tpu.memory_space<vmem>>, vector<1x32xf32>
    %5 = vector.shape_cast %4 : vector<1x32xf32> to vector<1x32xf32>
    %6 = vector.broadcast %5 : vector<1x32xf32> to vector<64x32xf32>
    %c0_7 = arith.constant 0 : index
    %c0_8 = arith.constant 0 : index
    %7 = vector.load %arg5[%c0_7, %c0_8] : memref<1x32xf32, #tpu.memory_space<vmem>>, vector<1x32xf32>
    %8 = vector.shape_cast %7 : vector<1x32xf32> to vector<1x32xf32>
    %9 = vector.broadcast %8 : vector<1x32xf32> to vector<64x32xf32>
    %10 = vector.extract_strided_slice %2 {offsets = [0, 0], sizes = [64, 96], strides = [1, 1]} : vector<256x96xf32> to vector<64x96xf32>
    %11 = vector.extract_strided_slice %10 {offsets = [0, 0], sizes = [64, 32], strides = [1, 1]} : vector<64x96xf32> to vector<64x32xf32>
    %12 = vector.extract_strided_slice %10 {offsets = [0, 32], sizes = [64, 32], strides = [1, 1]} : vector<64x96xf32> to vector<64x32xf32>
    %13 = tpu.concatenate %11, %12 in 0 : vector<64x32xf32>, vector<64x32xf32> -> vector<128x32xf32>
    %14 = arith.truncf %13 : vector<128x32xf32> to vector<128x32xbf16>
    %15 = vector.extract_strided_slice %3 {offsets = [0, 0], sizes = [64, 128], strides = [1, 1]} : vector<256x128xbf16> to vector<64x128xbf16>
    %cst_9 = arith.constant dense<0.000000e+00> : vector<64x32xf32>
    %16 = tpu.matmul %15, %14, %cst_9 {dimension_numbers = #tpu.dot_dimension_numbers<[1], [0], [0], [1], [0, 0, 1, 1], [], []>} : vector<64x128xbf16>, vector<128x32xbf16>, vector<64x32xf32> -> vector<64x32xf32>
    %17 = arith.addf %16, %6 : vector<64x32xf32>
    %cst_10 = arith.constant 0.000000e+00 : f32
    %18 = vector.broadcast %cst_10 : f32 to vector<64x32xf32>
    %19 = arith.maximumf %17, %18 : vector<64x32xf32>
    %20 = vector.extract_strided_slice %10 {offsets = [0, 64], sizes = [64, 32], strides = [1, 1]} : vector<64x96xf32> to vector<64x32xf32>
    %21 = arith.addf %20, %9 : vector<64x32xf32>
    %cst_11 = arith.constant 0.000000e+00 : f32
    %22 = vector.broadcast %cst_11 : f32 to vector<64x32xf32>
    %23 = arith.maximumf %21, %22 : vector<64x32xf32>
    %24 = arith.addf %19, %23 : vector<64x32xf32>
    %25 = vector.extract_strided_slice %2 {offsets = [64, 0], sizes = [64, 96], strides = [1, 1]} : vector<256x96xf32> to vector<64x96xf32>
    %26 = vector.extract_strided_slice %25 {offsets = [0, 0], sizes = [64, 32], strides = [1, 1]} : vector<64x96xf32> to vector<64x32xf32>
    %27 = vector.extract_strided_slice %25 {offsets = [0, 32], sizes = [64, 32], strides = [1, 1]} : vector<64x96xf32> to vector<64x32xf32>
    %28 = tpu.concatenate %26, %27 in 0 : vector<64x32xf32>, vector<64x32xf32> -> vector<128x32xf32>
    %29 = arith.truncf %28 : vector<128x32xf32> to vector<128x32xbf16>
    %30 = vector.extract_strided_slice %3 {offsets = [64, 0], sizes = [64, 128], strides = [1, 1]} : vector<256x128xbf16> to vector<64x128xbf16>
    %cst_12 = arith.constant dense<0.000000e+00> : vector<64x32xf32>
    %31 = tpu.matmul %30, %29, %cst_12 {dimension_numbers = #tpu.dot_dimension_numbers<[1], [0], [0], [1], [0, 0, 1, 1], [], []>} : vector<64x128xbf16>, vector<128x32xbf16>, vector<64x32xf32> -> vector<64x32xf32>
    %32 = arith.addf %31, %6 : vector<64x32xf32>
    %cst_13 = arith.constant 0.000000e+00 : f32
    %33 = vector.broadcast %cst_13 : f32 to vector<64x32xf32>
    %34 = arith.maximumf %32, %33 : vector<64x32xf32>
    %35 = vector.extract_strided_slice %25 {offsets = [0, 64], sizes = [64, 32], strides = [1, 1]} : vector<64x96xf32> to vector<64x32xf32>
    %36 = arith.addf %35, %9 : vector<64x32xf32>
    %cst_14 = arith.constant 0.000000e+00 : f32
    %37 = vector.broadcast %cst_14 : f32 to vector<64x32xf32>
    %38 = arith.maximumf %36, %37 : vector<64x32xf32>
    %39 = arith.addf %34, %38 : vector<64x32xf32>
    %40 = vector.extract_strided_slice %2 {offsets = [128, 0], sizes = [64, 96], strides = [1, 1]} : vector<256x96xf32> to vector<64x96xf32>
    %41 = vector.extract_strided_slice %40 {offsets = [0, 0], sizes = [64, 32], strides = [1, 1]} : vector<64x96xf32> to vector<64x32xf32>
    %42 = vector.extract_strided_slice %40 {offsets = [0, 32], sizes = [64, 32], strides = [1, 1]} : vector<64x96xf32> to vector<64x32xf32>
    %43 = tpu.concatenate %41, %42 in 0 : vector<64x32xf32>, vector<64x32xf32> -> vector<128x32xf32>
    %44 = arith.truncf %43 : vector<128x32xf32> to vector<128x32xbf16>
    %45 = vector.extract_strided_slice %3 {offsets = [128, 0], sizes = [64, 128], strides = [1, 1]} : vector<256x128xbf16> to vector<64x128xbf16>
    %cst_15 = arith.constant dense<0.000000e+00> : vector<64x32xf32>
    %46 = tpu.matmul %45, %44, %cst_15 {dimension_numbers = #tpu.dot_dimension_numbers<[1], [0], [0], [1], [0, 0, 1, 1], [], []>} : vector<64x128xbf16>, vector<128x32xbf16>, vector<64x32xf32> -> vector<64x32xf32>
    %47 = arith.addf %46, %6 : vector<64x32xf32>
    %cst_16 = arith.constant 0.000000e+00 : f32
    %48 = vector.broadcast %cst_16 : f32 to vector<64x32xf32>
    %49 = arith.maximumf %47, %48 : vector<64x32xf32>
    %50 = vector.extract_strided_slice %40 {offsets = [0, 64], sizes = [64, 32], strides = [1, 1]} : vector<64x96xf32> to vector<64x32xf32>
    %51 = arith.addf %50, %9 : vector<64x32xf32>
    %cst_17 = arith.constant 0.000000e+00 : f32
    %52 = vector.broadcast %cst_17 : f32 to vector<64x32xf32>
    %53 = arith.maximumf %51, %52 : vector<64x32xf32>
    %54 = arith.addf %49, %53 : vector<64x32xf32>
    %55 = vector.extract_strided_slice %2 {offsets = [192, 0], sizes = [64, 96], strides = [1, 1]} : vector<256x96xf32> to vector<64x96xf32>
    %56 = vector.extract_strided_slice %55 {offsets = [0, 0], sizes = [64, 32], strides = [1, 1]} : vector<64x96xf32> to vector<64x32xf32>
    %57 = vector.extract_strided_slice %55 {offsets = [0, 32], sizes = [64, 32], strides = [1, 1]} : vector<64x96xf32> to vector<64x32xf32>
    %58 = tpu.concatenate %56, %57 in 0 : vector<64x32xf32>, vector<64x32xf32> -> vector<128x32xf32>
    %59 = arith.truncf %58 : vector<128x32xf32> to vector<128x32xbf16>
    %60 = vector.extract_strided_slice %3 {offsets = [192, 0], sizes = [64, 128], strides = [1, 1]} : vector<256x128xbf16> to vector<64x128xbf16>
    %cst_18 = arith.constant dense<0.000000e+00> : vector<64x32xf32>
    %61 = tpu.matmul %60, %59, %cst_18 {dimension_numbers = #tpu.dot_dimension_numbers<[1], [0], [0], [1], [0, 0, 1, 1], [], []>} : vector<64x128xbf16>, vector<128x32xbf16>, vector<64x32xf32> -> vector<64x32xf32>
    %62 = arith.addf %61, %6 : vector<64x32xf32>
    %cst_19 = arith.constant 0.000000e+00 : f32
    %63 = vector.broadcast %cst_19 : f32 to vector<64x32xf32>
    %64 = arith.maximumf %62, %63 : vector<64x32xf32>
    %65 = vector.extract_strided_slice %55 {offsets = [0, 64], sizes = [64, 32], strides = [1, 1]} : vector<64x96xf32> to vector<64x32xf32>
    %66 = arith.addf %65, %9 : vector<64x32xf32>
    %cst_20 = arith.constant 0.000000e+00 : f32
    %67 = vector.broadcast %cst_20 : f32 to vector<64x32xf32>
    %68 = arith.maximumf %66, %67 : vector<64x32xf32>
    %69 = arith.addf %64, %68 : vector<64x32xf32>
    %70 = tpu.concatenate %24, %39, %54, %69 in 1 : vector<64x32xf32>, vector<64x32xf32>, vector<64x32xf32>, vector<64x32xf32> -> vector<64x128xf32>
    %c0_21 = arith.constant 0 : index
    %c0_22 = arith.constant 0 : index
    %71 = vector.load %arg6[%c0_21, %c0_22] : memref<64x128xf32, #tpu.memory_space<vmem>>, vector<64x128xf32>
    tpu.vector_store %arg6[%c0_21, %c0_22], %70 {strides = array<i32>} : memref<64x128xf32, #tpu.memory_space<vmem>>, vector<64x128xf32>,
    %cst_23 = arith.constant dense<0.000000e+00> : vector<128xf32>
    %72 = vector.multi_reduction <add>, %70, %cst_23 [0] : vector<64x128xf32> to vector<128xf32>
    %73 = vector.shape_cast %72 : vector<128xf32> to vector<1x128xf32>
    %74 = arith.mulf %70, %70 : vector<64x128xf32>
    %cst_24 = arith.constant dense<0.000000e+00> : vector<128xf32>
    %75 = vector.multi_reduction <add>, %74, %cst_24 [0] : vector<64x128xf32> to vector<128xf32>
    %76 = vector.shape_cast %75 : vector<128xf32> to vector<1x128xf32>
    %77 = tpu.concatenate %73, %76 in 0 : vector<1x128xf32>, vector<1x128xf32> -> vector<2x128xf32>
    %78 = vector.shape_cast %77 : vector<2x128xf32> to vector<1x2x128xf32>
    %c0_25 = arith.constant 0 : index
    %c0_26 = arith.constant 0 : index
    %c0_27 = arith.constant 0 : index
    %79 = vector.load %arg7[%c0_25, %c0_26, %c0_27] : memref<1x2x128xf32, #tpu.memory_space<vmem>>, vector<1x2x128xf32>
    tpu.vector_store %arg7[%c0_25, %c0_26, %c0_27], %78 {strides = array<i32>} : memref<1x2x128xf32, #tpu.memory_space<vmem>>, vector<1x2x128xf32>,
    return
  }
  func.func @transform_0(%arg0: i32) -> (i32, i32) {
    %c0_i32 = arith.constant 0 : i32
    %c0_i32_0 = arith.constant 0 : i32
    return %arg0, %c0_i32 : i32, i32
  }
  func.func @transform_1(%arg0: i32) -> (i32, i32) {
    %c0_i32 = arith.constant 0 : i32
    %c0_i32_0 = arith.constant 0 : i32
    return %arg0, %c0_i32 : i32, i32
  }
  func.func @transform_2(%arg0: i32) -> (i32, i32) {
    %c0_i32 = arith.constant 0 : i32
    %c0_i32_0 = arith.constant 0 : i32
    %c0_i32_1 = arith.constant 0 : i32
    return %c0_i32, %c0_i32_0 : i32, i32
  }
  func.func @transform_3(%arg0: i32) -> (i32, i32) {
    %c0_i32 = arith.constant 0 : i32
    %c0_i32_0 = arith.constant 0 : i32
    %c0_i32_1 = arith.constant 0 : i32
    return %c0_i32, %c0_i32_0 : i32, i32
  }
  func.func @transform_4(%arg0: i32) -> (i32, i32) {
    %c0_i32 = arith.constant 0 : i32
    %c0_i32_0 = arith.constant 0 : i32
    %c0_i32_1 = arith.constant 0 : i32
    return %c0_i32, %c0_i32_0 : i32, i32
  }
  func.func @transform_5(%arg0: i32) -> (i32, i32) {
    %c0_i32 = arith.constant 0 : i32
    %c0_i32_0 = arith.constant 0 : i32
    return %arg0, %c0_i32 : i32, i32
  }
  func.func @transform_6(%arg0: i32) -> (i32, i32, i32) {
    %c0_i32 = arith.constant 0 : i32
    %c0_i32_0 = arith.constant 0 : i32
    %c0_i32_1 = arith.constant 0 : i32
    return %arg0, %c0_i32, %c0_i32_0 : i32, i32, i32
  }
}

module attributes {stable_mosaic.version = 11 : i64} {
  func.func @_bn_apply_kernel(%arg0: i32, %arg1: memref<64x128xf32, #tpu.memory_space<vmem>>, %arg2: memref<1x128xf32, #tpu.memory_space<vmem>>, %arg3: memref<1x128xf32, #tpu.memory_space<vmem>>, %arg4: memref<64x128xf32, #tpu.memory_space<vmem>>) attributes {dimension_semantics = [#tpu.dimension_semantics<parallel>], iteration_bounds = array<i64: 2>, scalar_prefetch = 0 : i64, scratch_operands = 0 : i64, tpu.core_type = #tpu.core_type<tc>, window_params = [{transform_indices = @transform_0, window_bounds = array<i64: 64, 128>}, {pipeline_mode = #tpu.pipeline_mode<synchronous>, transform_indices = @transform_1, window_bounds = array<i64: 1, 128>}, {pipeline_mode = #tpu.pipeline_mode<synchronous>, transform_indices = @transform_2, window_bounds = array<i64: 1, 128>}, {transform_indices = @transform_3, window_bounds = array<i64: 64, 128>}]} {
    %c0 = arith.constant 0 : index
    %c0_0 = arith.constant 0 : index
    %0 = vector.load %arg1[%c0, %c0_0] : memref<64x128xf32, #tpu.memory_space<vmem>>, vector<64x128xf32>
    %c0_1 = arith.constant 0 : index
    %c0_2 = arith.constant 0 : index
    %1 = vector.load %arg2[%c0_1, %c0_2] : memref<1x128xf32, #tpu.memory_space<vmem>>, vector<1x128xf32>
    %2 = vector.broadcast %1 : vector<1x128xf32> to vector<64x128xf32>
    %3 = arith.mulf %0, %2 : vector<64x128xf32>
    %c0_3 = arith.constant 0 : index
    %c0_4 = arith.constant 0 : index
    %4 = vector.load %arg3[%c0_3, %c0_4] : memref<1x128xf32, #tpu.memory_space<vmem>>, vector<1x128xf32>
    %5 = vector.broadcast %4 : vector<1x128xf32> to vector<64x128xf32>
    %6 = arith.addf %3, %5 : vector<64x128xf32>
    %c0_5 = arith.constant 0 : index
    %c0_6 = arith.constant 0 : index
    %7 = vector.load %arg4[%c0_5, %c0_6] : memref<64x128xf32, #tpu.memory_space<vmem>>, vector<64x128xf32>
    tpu.vector_store %arg4[%c0_5, %c0_6], %6 {strides = array<i32>} : memref<64x128xf32, #tpu.memory_space<vmem>>, vector<64x128xf32>,
    return
  }
  func.func @transform_0(%arg0: i32) -> (i32, i32) {
    %c0_i32 = arith.constant 0 : i32
    %c0_i32_0 = arith.constant 0 : i32
    return %arg0, %c0_i32 : i32, i32
  }
  func.func @transform_1(%arg0: i32) -> (i32, i32) {
    %c0_i32 = arith.constant 0 : i32
    %c0_i32_0 = arith.constant 0 : i32
    %c0_i32_1 = arith.constant 0 : i32
    return %c0_i32, %c0_i32_0 : i32, i32
  }
  func.func @transform_2(%arg0: i32) -> (i32, i32) {
    %c0_i32 = arith.constant 0 : i32
    %c0_i32_0 = arith.constant 0 : i32
    %c0_i32_1 = arith.constant 0 : i32
    return %c0_i32, %c0_i32_0 : i32, i32
  }
  func.func @transform_3(%arg0: i32) -> (i32, i32) {
    %c0_i32 = arith.constant 0 : i32
    %c0_i32_0 = arith.constant 0 : i32
    return %arg0, %c0_i32 : i32, i32
  }
}

</mosaic_0001>

<bundles_post_ra>
// kernel: tile.13
= control target key start
LH: loop header
LB: loop body
LE: loop exit
PB: predicated region body
PF: predicated region fallthrough
CT: control target
= control target key end

     0   :  { %s22_s0 = inlined_call_operand.vmem [shape: f32[32], index: 0, kind: input, shape index: {}]   ;;  %s23_s1 = inlined_call_operand.vmem [shape: f32[4,32], index: 1, kind: output, shape index: {}]  }
   0x1   :  { %v4_v0 = vld [vmem:[%s22_s0] ss:$0 sm:$0xff] }
   0x2   :  { %5 = vst [vmem:[%s23_s1] sm:$0xf] %v4_v0 }

// kernel: tile.14
= control target key start
LH: loop header
LB: loop body
LE: loop exit
PB: predicated region body
PF: predicated region fallthrough
CT: control target
= control target key end

     0   :  { %vm8_vm0 = vcmask 261120   ;;  %s40_s8 = smov 32   ;;  %s41_s9 = smov 64   ;;  %vm14_vm1 = vcmask 1048320   ;;  %vm20_vm2 = vcmask 785920   ;;  %vm26_vm3 = vcmask 523520   ;;  %s58_s0 = inlined_call_operand.vmem [shape: f32[4,32], index: 0, kind: input, shape index: {}]   ;;  %s59_s1 = inlined_call_operand.vmem [shape: f32[1,128], index: 1, kind: output, shape index: {}]  }
   0x1   :  { %v5_v0 = vld [vmem:[%s58_s0] sm:$0xf]  ;;  %s39_s0 = smov 96  }
   0x2   :  { %6 = vst [vmem:[#allocation1] sm:$0xf] %v5_v0 }
   0x9   :  { %v11_v1 = vld [vmem:[#allocation1 + $0x3] sm:$0x1]   ;;  %v23_v2 = vld [vmem:[#allocation1 + $0x1] sm:$0x1]   ;;  %v7_v3 = vld [vmem:[#allocation1] sm:$0x1]  }
   0xa   :  { %12 = vrot.lane.b32.xlu0 %v11_v1, %s39_s0  ;;  %24 = vrot.lane.b32.xlu1 %v23_v2, %s40_s8  ;;  %v17_v4 = vld [vmem:[#allocation1 + $0x2] sm:$0x1]   ;;  %9 = vst.msk [vmem:[#allocation0] sm:$0x1] %vm8_vm0, %v7_v3  }
   0xe   :  { %18 = vrot.lane.b32.xlu0 %v17_v4, %s41_s9 }
  0x7c   :  { %v13_v5 = vpop.permute.xlu0 %12   ;;  %v25_v6 = vpop.permute.xlu1 %24  }
  0x7d   :  { %15 = vst.msk [vmem:[#allocation0] sm:$0x1] %vm14_vm1, %v13_v5  }
  0x80   :  { %v19_v7 = vpop.permute.xlu0 %18  }
  0x81   :  { %21 = vst.msk [vmem:[#allocation0] sm:$0x1] %vm20_vm2, %v19_v7  }
  0x82   :  { %27 = vst.msk [vmem:[#allocation0] sm:$0x1] %vm26_vm3, %v25_v6  }
  0x89   :  { %v32_v8 = vld [vmem:[#allocation0] sm:$0x1] }
  0x8a   :  { %35 = vst [vmem:[%s59_s1] sm:$0x1] %v32_v8 }

// kernel: rgcn_layer_forward.3
= control target key start
LH: loop header
LB: loop body
LE: loop exit
PB: predicated region body
PF: predicated region fallthrough
CT: control target
= control target key end

     0   :  { %s325_s12 = smov 0   ;;  %s348_s0 = inlined_call_operand.vmem [shape: f32[128,128], index: 0, kind: input, shape index: {}]   ;;  %s349_s1 = inlined_call_operand.vmem [shape: f32[1,128], index: 1, kind: input, shape index: {}]   ;;  %s350_s2 = inlined_call_operand.vmem [shape: f32[1,128], index: 2, kind: input, shape index: {}]   ;;  %s351_s3 = inlined_call_operand.vmem [shape: f32[128,128], index: 3, kind: output, shape index: {}]  }
   0x1 LB: > { %s276_s13 = sadd.s32 4294967295, %s303_s12   ;;  %p280_p0 = scmp.ge.s32.totalorder %s303_s12, 1  ;;  %s303_s12 = sphi %s325_s12, %s13_s12  }
   0x2   : > { %p138_p1 = scmp.lt.s32.totalorder %s303_s12, 3 }
   0x4   : > { %p139_p2 = pnand %p280_p0, %p138_p1 }
   0x5   : > { %s281_s14 = sshll.u32 (!%p139_p2), %s276_s13, 3 }
   0x6   : > { %142 = sbr.rel (%p139_p2) target bundleno = 23 (0x17), region = 32  ;;  %p163_p3 = scmp.lt.s32.totalorder (!%p139_p2), %s281_s14, 15 }
   0xb   : > { %s353_s14 = smov (!%p163_p3, %s281_s14), 15  ;;  %v285_v0 = vld [vmem:[%s349_s1] ss:$0 sm:$0xff] }
   0xc   : > { %s282_s15 = sshll.u32 %s353_s14, 3  ;;  %v286_v1 = vld [vmem:[%s350_s2] ss:$0 sm:$0xff] }
   0xd   : > { %s166_s20 = scalar_lea.vmem %s348_s0, %s282_s15  ;;  %s172_s25 = scalar_lea.vmem %s351_s3, %s282_s15 }
   0xe   : > { %v174_v2 = vld [vmem:[%s166_s20] sm:$0xff]  ;;  %v175_v3 = vld [vmem:[%s166_s20 + $0x8] sm:$0xff]  ;;  %v176_v4 = vld [vmem:[%s166_s20 + $0x10] sm:$0xff] }
   0xf   : > { %v189_v5 = vmul.f32 %v285_v0, %v174_v2  ;;  %v190_v6 = vmul.f32 %v285_v0, %v175_v3  ;;  %v191_v7 = vmul.f32 %v285_v0, %v176_v4  ;;  %v177_v8 = vld [vmem:[%s166_s20 + $0x18] sm:$0xff]  ;;  %v178_v9 = vld [vmem:[%s166_s20 + $0x20] sm:$0xff]  ;;  %v179_v10 = vld [vmem:[%s166_s20 + $0x28] sm:$0xff] }
  0x10   : > { %v192_v11 = vmul.f32 %v285_v0, %v177_v8  ;;  %v193_v12 = vmul.f32 %v285_v0, %v178_v9  ;;  %v194_v13 = vmul.f32 %v285_v0, %v179_v10  ;;  %v180_v14 = vld [vmem:[%s166_s20 + $0x30] sm:$0xff]  ;;  %v181_v15 = vld [vmem:[%s166_s20 + $0x38] sm:$0xff] }
  0x11   : > { %v204_v16 = vadd.f32 %v286_v1, %v189_v5  ;;  %v205_v17 = vadd.f32 %v286_v1, %v190_v6  ;;  %v206_v18 = vadd.f32 %v286_v1, %v191_v7  ;;  %v195_v19 = vmul.f32 %v285_v0, %v180_v14 }
  0x12   : > { %v207_v20 = vadd.f32 %v286_v1, %v192_v11  ;;  %v208_v21 = vadd.f32 %v286_v1, %v193_v12  ;;  %v209_v22 = vadd.f32 %v286_v1, %v194_v13  ;;  %v196_v23 = vmul.f32 %v285_v0, %v181_v15 }
  0x13   : > { %212 = vst [vmem:[%s172_s25] sm:$0xff] %v204_v16  ;;  %213 = vst [vmem:[%s172_s25 + $0x8] sm:$0xff] %v205_v17  ;;  %v210_v24 = vadd.f32 %v286_v1, %v195_v19 }
  0x14   : > { %214 = vst [vmem:[%s172_s25 + $0x10] sm:$0xff] %v206_v18  ;;  %215 = vst [vmem:[%s172_s25 + $0x18] sm:$0xff] %v207_v20  ;;  %v211_v25 = vadd.f32 %v286_v1, %v196_v23 }
  0x15   : > { %216 = vst [vmem:[%s172_s25 + $0x20] sm:$0xff] %v208_v21  ;;  %217 = vst [vmem:[%s172_s25 + $0x28] sm:$0xff] %v209_v22 }
  0x16   : > { %218 = vst [vmem:[%s172_s25 + $0x30] sm:$0xff] %v210_v24  ;;  %219 = vst [vmem:[%s172_s25 + $0x38] sm:$0xff] %v211_v25 }
  0x17 PF: > { %s13_s12 = sadd.s32 1, %s303_s12  }
  0x18   : > { %p10_p4 = scmp.ge.s32.totalorder %s13_s12, 4  }
  0x1a   :  { %12 = sbr.rel (!%p10_p4) target bundleno = 1 (0x1), region = 62 }

// kernel: rgcn_layer_forward.2
= control target key start
LH: loop header
LB: loop body
LE: loop exit
PB: predicated region body
PF: predicated region fallthrough
CT: control target
= control target key end

     0   :  { %s2152_s21 = smov 0   ;;  %s2630_s0 = inlined_call_operand.vmem [shape: bf16[512,16], index: 0, kind: input, shape index: {}]   ;;  %s2631_s1 = inlined_call_operand.vmem [shape: bf16[512,128], index: 1, kind: input, shape index: {}]   ;;  %s2632_s2 = inlined_call_operand.vmem [shape: bf16[16,96], index: 2, kind: input, shape index: {}]   ;;  %s2633_s3 = inlined_call_operand.vmem [shape: f32[1,32], index: 3, kind: input, shape index: {}]   ;;  %s2634_s4 = inlined_call_operand.vmem [shape: f32[1,32], index: 4, kind: input, shape index: {}]   ;;  %s2635_s5 = inlined_call_operand.vmem [shape: f32[128,128], index: 5, kind: output, shape index: {0}]   ;;  %s2636_s6 = inlined_call_operand.vmem [shape: f32[2,2,128], index: 6, kind: output, shape index: {1}]  }
   0x1 LB: > { %s2158_s22 = sadd.s32 4294967295, %s2112_s21   ;;  %p1710_p0 = scmp.ge.s32.totalorder %s2112_s21, 1  ;;  %s2112_s21 = sphi %s2152_s21, %s17_s21  }
   0x2   : > { %p227_p1 = scmp.lt.s32.totalorder %s2112_s21, 3 }
   0x4   : > { %p228_p2 = pnand %p1710_p0, %p227_p1 }
   0x5   : > { %s1711_s25 = sshll.u32 (!%p228_p2), %s2158_s22, 5  ;;  %s2114_s30 = smov (!%p228_p2), 96  }
   0x6   : > { %231 = sbr.rel (%p228_p2) target bundleno = 799 (0x31f), region = 40  ;;  %p267_p3 = scmp.lt.s32.totalorder (!%p228_p2), %s1711_s25, 63 }
   0x7   : > { %s2115_s12 = smov (!%p228_p2), 64   ;;  %s2116_s15 = smov (!%p228_p2), 32  }
   0x8   : > { %s1715_s16 = sshll.u32 (!%p228_p2), %s2158_s22, 3  ;;  %p284_p5 = scmp.lt.s32.totalorder (!%p228_p2), %s2158_s22, 1 }
   0x9   : > { %p279_p4 = scmp.lt.s32.totalorder (!%p228_p2), %s1715_s16, 15 }
   0xb   : > { %v2073_v0 = vld [vmem:[%s2632_s2] sm:$0xff]   ;;  %s2638_s25 = smov (!%p267_p3, %s1711_s25), 63  ;;  %vm409_vm0 = vcmask 130048   ;;  %s2640_s16 = smov (!%p279_p4, %s1715_s16), 15  ;;  %vm1535_vm1 = vcmask 261120   ;;  %vm1544_vm2 = vcmask 523264  }
   0xc   : > { %1836 = vmatprep.subr.bf16.mxu0 %v2073_v0  ;;  %s1712_s26 = sshll.u32 %s2638_s25, 2  ;;  %s1716_s17 = sshll.u32 %s2640_s16, 3  ;;  %vm1553_vm3 = vcmask 785408   ;;  %vm1604_vm4 = vcmask 1040384  }
   0xd   : > { %1837 = vmatpush3.bf16.msra.mxu0 %v2073_v0  ;;  %s2174_s29 = scalar_lea.vmem %s2630_s0, %s1712_s26  ;;  %s2261_s9 = scalar_lea.vmem %s2631_s1, %s1712_s26 }
   0xe   : > { %v2074_v1 = vld [vmem:[%s2174_s29] sm:$0xff]   ;;  %v2075_v2 = vld [vmem:[%s2174_s29 + $0x8] sm:$0xff]   ;;  %v2076_v3 = vld [vmem:[%s2174_s29 + $0x10] sm:$0xff]   ;;  %s2577_s20 = scalar_lea.vmem %s2635_s5, %s1716_s17  ;;  %s2642_s22 = smov (!%p284_p5, %s2158_s22), 1 }
   0xf   : > { %1838 = vmatprep.mubr.msk.bf16.mxu0 %vm409_vm0, %v2074_v1  ;;  %v2077_v4 = vld [vmem:[%s2174_s29 + $0x18] sm:$0xff]   ;;  %v2078_v5 = vld [vmem:[%s2174_s29 + $0x20] sm:$0xff]   ;;  %v2079_v6 = vld [vmem:[%s2174_s29 + $0x28] sm:$0xff]   ;;  %s1717_s23 = sshll.u32 %s2642_s22, 1 }
  0x10   : > { %1839 = vmatmul.mubr.msk.bf16.vlgmr.msra.gmra.mxu0 %vm409_vm0, %v2075_v2  ;;  %v2080_v7 = vld [vmem:[%s2174_s29 + $0x30] sm:$0xff]   ;;  %v2081_v8 = vld [vmem:[%s2174_s29 + $0x38] sm:$0xff]   ;;  %v2082_v9 = vld [vmem:[%s2174_s29 + $0x40] sm:$0xff]   ;;  %s287_s26 = scalar_lea.vmem %s2636_s6, %s1717_s23 }
  0x11   : > { %1842 = vmatprep.mubr.msk.bf16.mxu0 %vm409_vm0, %v2076_v3  ;;  %v2083_v10 = vld [vmem:[%s2174_s29 + $0x48] sm:$0xff]   ;;  %v2084_v11 = vld [vmem:[%s2174_s29 + $0x50] sm:$0xff]   ;;  %v2085_v12 = vld [vmem:[%s2174_s29 + $0x58] sm:$0xff]  }
  0x12   : > { %v2086_v13 = vld [vmem:[%s2174_s29 + $0x60] sm:$0xff]   ;;  %v2087_v14 = vld [vmem:[%s2174_s29 + $0x68] sm:$0xff]   ;;  %v2088_v15 = vld [vmem:[%s2174_s29 + $0x70] sm:$0xff]  }
  0x13   : > { %v2089_v16 = vld [vmem:[%s2174_s29 + $0x78] sm:$0xff]   ;;  %v2090_v39 = vld [vmem:[%s2261_s9] sm:$0xff]  }
  0x14   : > { %1886 = vmatprep.mubr.bf16.mxu1 %v2090_v39  ;;  %v2094_v2 = vld [vmem:[%s2261_s9 + $0x40] sm:$0xff]  }
  0x15   : > { %v1752_v3 = vld [vmem:[%s2634_s4] ss:$0 sm:$0xff] }
  0x18   : > { %1843 = vmatmul.mubr.msk.bf16.gmra.mxu0 %vm409_vm0, %v2077_v4 }
  0x19   : > { %1846 = vmatprep.mubr.msk.bf16.mxu0 %vm409_vm0, %v2078_v5 }
  0x20   : > { %1847 = vmatmul.mubr.msk.bf16.gmra.mxu0 %vm409_vm0, %v2079_v6 }
  0x21   : > { %1850 = vmatprep.mubr.msk.bf16.mxu0 %vm409_vm0, %v2080_v7 }
  0x28   : > { %1851 = vmatmul.mubr.msk.bf16.gmra.mxu0 %vm409_vm0, %v2081_v8 }
  0x29   : > { %1854 = vmatprep.mubr.msk.bf16.mxu0 %vm409_vm0, %v2082_v9 }
  0x30   : > { %1855 = vmatmul.mubr.msk.bf16.gmra.mxu0 %vm409_vm0, %v2083_v10 }
  0x31   : > { %1858 = vmatprep.mubr.msk.bf16.mxu0 %vm409_vm0, %v2084_v11 }
  0x38   : > { %1859 = vmatmul.mubr.msk.bf16.gmra.mxu0 %vm409_vm0, %v2085_v12 }
  0x39   : > { %1862 = vmatprep.mubr.msk.bf16.mxu0 %vm409_vm0, %v2086_v13 }
  0x40   : > { %1863 = vmatmul.mubr.msk.bf16.gmra.mxu0 %vm409_vm0, %v2087_v14 }
  0x41   : > { %1866 = vmatprep.mubr.msk.bf16.mxu0 %vm409_vm0, %v2088_v15 }
  0x48   : > { %1867 = vmatmul.mubr.msk.bf16.gmra.mxu0 %vm409_vm0, %v2089_v16 }
  0x49   : > { %1934 = vmatprep.mubr.bf16.mxu0 %v2094_v2 }
  0xd0   : > { %v2208_v17 = vpop.f32.mrf.mxu0 }
  0xd2   : > { %v2210_v18 = vpop.f32.mrf.mxu0 }
  0xd4   : > { %v2212_v19 = vpop.f32.mrf.mxu0 }
  0xd5   : > { %v2003_v20 = vpack.i.bf16 %v2212_v19, %v2208_v17 }
  0xd6   : > { %v2216_v21 = vpop.f32.mrf.mxu0 }
  0xd7   : > { %2004 = vrot.lane.b32.xlu1 %v2003_v20, %s2114_s30  ;;  %v2008_v23 = vpack.i.bf16 %v2216_v21, %v2210_v18 }
  0xd8   : > { %v2219_v22 = vpop.f32.mrf.mxu0 }
  0xda   : > { %v2223_v24 = vpop.f32.mrf.mxu0 }
  0xdb   : > { %2009 = vrot.lane.b32.xlu1 %v2008_v23, %s2114_s30 }
  0xdc   : > { %v2226_v25 = vpop.f32.mrf.mxu0 }
  0xdd   : > { %v1993_v26 = vpack.i.bf16 %v2226_v25, %v2219_v22 }
  0xde   : > { %v2230_v27 = vpop.f32.mrf.mxu0 }
  0xdf   : > { %1994 = vrot.lane.b32.xlu0 %v1993_v26, %s2114_s30  ;;  %v1998_v29 = vpack.i.bf16 %v2230_v27, %v2223_v24  ;;  %v698_v39 = vpack.c.bf16 %v2230_v27, %v2223_v24 }
  0xe0   : > { %v2233_v28 = vpop.f32.mrf.mxu0 }
  0xe2   : > { %v2237_v30 = vpop.f32.mrf.mxu0 }
  0xe3   : > { %1999 = vrot.lane.b32.xlu0 %v1998_v29, %s2114_s30  ;;  %v699_v29 = vpack.c.bf16 %v2226_v25, %v2219_v22 }
  0xe4   : > { %v2240_v31 = vpop.f32.mrf.mxu0 }
  0xe5   : > { %v2043_v57 = vpack.i.bf16 %v2240_v31, %v2233_v28 }
  0xe6   : > { %v2242_v32 = vpop.f32.mrf.mxu0 }
  0xe7   : > { %v2048_v59 = vpack.i.bf16 %v2242_v32, %v2237_v30 }
  0xe8   : > { %v2244_v33 = vpop.f32.mrf.mxu0 }
  0xea   : > { %v2246_v34 = vpop.f32.mrf.mxu0 }
  0xec   : > { %v2248_v35 = vpop.f32.mrf.mxu0 }
  0xed   : > { %v2018_v49 = vpack.i.bf16 %v2248_v35, %v2244_v33 }
  0xee   : > { %v2250_v36 = vpop.f32.mrf.mxu0 }
  0xef   : > { %v2033_v53 = vpack.i.bf16 %v2250_v36, %v2246_v34 }
  0xf0   : > { %v2252_v37 = vpop.f32.mrf.mxu0 }
  0xf2   : > { %v2254_v38 = vpop.f32.mrf.mxu0 }
  0xf4   : > { %v2264_v40 = vpop.f32.mrf.mxu0 }
  0xf5   : > { %v2028_v51 = vpack.i.bf16 %v2264_v40, %v2252_v37 }
  0xf6   : > { %v2266_v41 = vpop.f32.mrf.mxu0 }
  0xf7   : > { %v2038_v55 = vpack.i.bf16 %v2266_v41, %v2254_v38 }
  0xf8   : > { %v2268_v42 = vpop.f32.mrf.mxu0 }
  0xfa   : > { %v2270_v43 = vpop.f32.mrf.mxu0 }
  0xfc   : > { %v2272_v44 = vpop.f32.mrf.mxu0 }
  0xfd   : > { %v2013_v45 = vpack.i.bf16 %v2272_v44, %v2268_v42 }
  0xfe   : > { %v2276_v46 = vpop.f32.mrf.mxu0 }
  0xff   : > { %v2023_v47 = vpack.i.bf16 %v2276_v46, %v2270_v43  ;;  %2014 = vrot.lane.b32.xlu0 %v2013_v45, %s2114_s30  ;;  %v697_v45 = vpack.c.bf16 %v2212_v19, %v2208_v17 }
 0x100   : > { %v2281_v48 = vpop.f32.mrf.mxu0 }
 0x101   : > { %2024 = vrot.lane.b32.xlu1 %v2023_v47, %s2114_s30  ;;  %v696_v47 = vpack.c.bf16 %v2216_v21, %v2210_v18 }
 0x102   : > { %v2286_v50 = vpop.f32.mrf.mxu0 }
 0x103   : > { %2019 = vrot.lane.b32.xlu0 %v2018_v49, %s2114_s30 }
 0x104   : > { %v2291_v52 = vpop.f32.mrf.mxu0 }
 0x105   : > { %2029 = vrot.lane.b32.xlu1 %v2028_v51, %s2114_s30  ;;  %v2063_v63 = vpack.i.bf16 %v2291_v52, %v2281_v48 }
 0x106   : > { %v2296_v54 = vpop.f32.mrf.mxu0 }
 0x107   : > { %2034 = vrot.lane.b32.xlu0 %v2033_v53, %s2114_s30  ;;  %v2068_v1 = vpack.i.bf16 %v2296_v54, %v2286_v50 }
 0x108   : > { %v2301_v56 = vpop.f32.mrf.mxu0 }
 0x109   : > { %2039 = vrot.lane.b32.xlu1 %v2038_v55, %s2114_s30  ;;  %v2091_v55 = vld [vmem:[%s2261_s9 + $0x8] sm:$0xff]  }
 0x10a   : > { %v2306_v58 = vpop.f32.mrf.mxu0 }
 0x10b   : > { %2044 = vrot.lane.b32.xlu0 %v2043_v57, %s2114_s30 }
 0x10c   : > { %v2311_v60 = vpop.f32.mrf.mxu0 }
 0x10d   : > { %v2053_v61 = vpack.i.bf16 %v2311_v60, %v2301_v56  ;;  %2049 = vrot.lane.b32.xlu1 %v2048_v59, %s2114_s30  ;;  %v2092_v59 = vld [vmem:[%s2261_s9 + $0x10] sm:$0xff]  }
 0x10e   : > { %v2316_v62 = vpop.f32.mrf.mxu0 }
 0x10f   : > { %2054 = vrot.lane.b32.xlu0 %v2053_v61, %s2114_s30  ;;  %v2058_v0 = vpack.i.bf16 %v2316_v62, %v2306_v58 }
 0x111   : > { %2059 = vrot.lane.b32.xlu1 %v2058_v0, %s2114_s30 }
 0x113   : > { %2064 = vrot.lane.b32.xlu0 %v2063_v63, %s2114_s30 }
 0x115   : > { %2069 = vrot.lane.b32.xlu1 %v2068_v1, %s2114_s30 }
 0x117   : > { %801 = vrot.lane.b32.xlu0 %v1752_v3, %s2115_s12 }
 0x149   : > { %v2005_v4 = vpop.permute.xlu1 %2004 }
 0x14a   : > { %v2007_v10 = vunpack.i.h.bf16 %v2005_v4  ;;  %v2006_v11 = vunpack.i.l.bf16 %v2005_v4 }
 0x14c   : > { %v701_v16 = vpack.c.bf16 %v2007_v10, %v2006_v11 }
 0x14d   : > { %v2010_v14 = vpop.permute.xlu1 %2009 }
 0x14e   : > { %v2012_v20 = vunpack.i.h.bf16 %v2010_v14  ;;  %v2011_v23 = vunpack.i.l.bf16 %v2010_v14 }
 0x150   : > { %v700_v26 = vpack.c.bf16 %v2012_v20, %v2011_v23  ;;  %v2096_v23 = vld [vmem:[%s2261_s9 + $0x20] sm:$0xff]  }
 0x151   : > { %v1995_v5 = vpop.permute.xlu0 %1994 }
 0x152   : > { %v1997_v6 = vunpack.i.h.bf16 %v1995_v5  ;;  %v1996_v7 = vunpack.i.l.bf16 %v1995_v5 }
 0x154   : > { %v703_v8 = vpack.c.bf16 %v1997_v6, %v1996_v7 }
 0x155   : > { %v2000_v9 = vpop.permute.xlu0 %1999 }
 0x156   : > { %v2002_v12 = vunpack.i.h.bf16 %v2000_v9  ;;  %v2001_v13 = vunpack.i.l.bf16 %v2000_v9  ;;  %1870 = vmatprep.subr.bf16.mxu1 %v703_v8 }
 0x157   : > { %1871 = vmatpush3.bf16.msra.mxu1 %v703_v8 }
 0x158   : > { %v702_v15 = vpack.c.bf16 %v2002_v12, %v2001_v13  ;;  %v2093_v13 = vld [vmem:[%s2261_s9 + $0x18] sm:$0xff]  }
 0x15a   : > { %1872 = vmatprep.subr.bf16.mxu1 %v702_v15 }
 0x15b   : > { %1873 = vmatpush3.bf16.msra.mxu1 %v702_v15 }
 0x15c   : > { %1874 = vmatprep.subr.bf16.mxu1 %v701_v16 }
 0x15f   : > { %1875 = vmatpush3.bf16.msra.mxu1 %v701_v16 }
 0x160   : > { %1876 = vmatprep.subr.bf16.mxu1 %v700_v26 }
 0x163   : > { %1877 = vmatpush3.bf16.msra.mxu1 %v700_v26 }
 0x164   : > { %1878 = vmatprep.subr.bf16.mxu1 %v699_v29 }
 0x167   : > { %1879 = vmatpush3.bf16.msra.mxu1 %v699_v29 }
 0x168   : > { %1880 = vmatprep.subr.bf16.mxu1 %v698_v39 }
 0x16b   : > { %1881 = vmatpush3.bf16.msra.mxu1 %v698_v39 }
 0x16c   : > { %1882 = vmatprep.subr.bf16.mxu1 %v697_v45 }
 0x16f   : > { %1883 = vmatpush3.bf16.msra.mxu1 %v697_v45 }
 0x170   : > { %1884 = vmatprep.subr.bf16.mxu1 %v696_v47 }
 0x171   : > { %v2015_v49 = vpop.permute.xlu0 %2014 }
 0x172   : > { %v2017_v51 = vunpack.i.h.bf16 %v2015_v49  ;;  %v2016_v53 = vunpack.i.l.bf16 %v2015_v49 }
 0x173   : > { %1885 = vmatpush3.bf16.msra.mxu1 %v696_v47  ;;  %v2025_v57 = vpop.permute.xlu1 %2024 }
 0x174   : > { %v1092_v61 = vpack.c.bf16 %v2017_v51, %v2016_v53  ;;  %v2027_v63 = vunpack.i.h.bf16 %v2025_v57  ;;  %v2026_v0 = vunpack.i.l.bf16 %v2025_v57  ;;  %v1088_v57 = vpack.c.bf16 %v2272_v44, %v2268_v42 }
 0x175   : > { %v2020_v1 = vpop.permute.xlu0 %2019 }
 0x176   : > { %v1091_v2 = vpack.c.bf16 %v2027_v63, %v2026_v0  ;;  %v2022_v3 = vunpack.i.h.bf16 %v2020_v1  ;;  %v2021_v4 = vunpack.i.l.bf16 %v2020_v1  ;;  %1887 = vmatmul.mubr.bf16.vlgmr.msra.gmra.mxu1 %v2091_v55  ;;  %1918 = vmatprep.subr.bf16.mxu0 %v1092_v61  ;;  %v895_v63 = vpack.c.bf16 %v2248_v35, %v2244_v33 }
 0x177   : > { %1919 = vmatpush3.bf16.msra.mxu0 %v1092_v61  ;;  %v2030_v5 = vpop.permute.xlu1 %2029  ;;  %1890 = vmatprep.mubr.bf16.mxu1 %v2092_v59  ;;  %v1087_v0 = vpack.c.bf16 %v2276_v46, %v2270_v43 }
 0x178   : > { %v899_v6 = vpack.c.bf16 %v2022_v3, %v2021_v4  ;;  %v2032_v7 = vunpack.i.h.bf16 %v2030_v5  ;;  %v2031_v8 = vunpack.i.l.bf16 %v2030_v5  ;;  %1920 = vmatprep.subr.bf16.mxu0 %v1091_v2  ;;  %v1086_v3 = vpack.c.bf16 %v2264_v40, %v2252_v37 }
 0x179   : > { %v2035_v9 = vpop.permute.xlu0 %2034 }
 0x17a   : > { %v1090_v10 = vpack.c.bf16 %v2032_v7, %v2031_v8  ;;  %v2037_v11 = vunpack.i.h.bf16 %v2035_v9  ;;  %v2036_v12 = vunpack.i.l.bf16 %v2035_v9  ;;  %1894 = vmatprep.subr.bf16.mxu1 %v899_v6 }
 0x17b   : > { %1895 = vmatpush3.bf16.msra.mxu1 %v899_v6  ;;  %v2040_v14 = vpop.permute.xlu1 %2039  ;;  %1921 = vmatpush3.bf16.msra.mxu0 %v1091_v2  ;;  %v894_v2 = vpack.c.bf16 %v2250_v36, %v2246_v34 }
 0x17c   : > { %v898_v15 = vpack.c.bf16 %v2037_v11, %v2036_v12  ;;  %v2042_v16 = vunpack.i.h.bf16 %v2040_v14  ;;  %v2041_v20 = vunpack.i.l.bf16 %v2040_v14  ;;  %1922 = vmatprep.subr.bf16.mxu0 %v1090_v10  ;;  %v893_v12 = vpack.c.bf16 %v2240_v31, %v2233_v28 }
 0x17d   : > { %v2045_v26 = vpop.permute.xlu0 %2044 }
 0x17e   : > { %v1089_v29 = vpack.c.bf16 %v2042_v16, %v2041_v20  ;;  %v2047_v39 = vunpack.i.h.bf16 %v2045_v26  ;;  %v2046_v45 = vunpack.i.l.bf16 %v2045_v26  ;;  %1891 = vmatmul.mubr.bf16.gmra.mxu1 %v2093_v13  ;;  %1896 = vmatprep.subr.bf16.mxu1 %v898_v15  ;;  %v1085_v13 = vpack.c.bf16 %v2266_v41, %v2254_v38  ;;  %v2095_v26 = vld [vmem:[%s2261_s9 + $0x48] sm:$0xff]  }
 0x17f   : > { %1897 = vmatpush3.bf16.msra.mxu1 %v898_v15  ;;  %v2050_v47 = vpop.permute.xlu1 %2049  ;;  %1923 = vmatpush3.bf16.msra.mxu0 %v1090_v10 }
 0x180   : > { %v897_v49 = vpack.c.bf16 %v2047_v39, %v2046_v45  ;;  %v2052_v51 = vunpack.i.h.bf16 %v2050_v47  ;;  %v2051_v53 = vunpack.i.l.bf16 %v2050_v47  ;;  %1924 = vmatprep.subr.bf16.mxu0 %v1089_v29  ;;  %1910 = vmatprep.mubr.bf16.mxu1 %v2096_v23 }
 0x181   : > { %v2055_v55 = vpop.permute.xlu0 %2054 }
 0x182   : > { %v896_v59 = vpack.c.bf16 %v2052_v51, %v2051_v53  ;;  %1898 = vmatprep.subr.bf16.mxu1 %v897_v49  ;;  %v2057_v6 = vunpack.i.h.bf16 %v2055_v55  ;;  %v2056_v7 = vunpack.i.l.bf16 %v2055_v55 }
 0x183   : > { %1899 = vmatpush3.bf16.msra.mxu1 %v897_v49  ;;  %1925 = vmatpush3.bf16.msra.mxu0 %v1089_v29  ;;  %v2097_v49 = vld [vmem:[%s2261_s9 + $0x28] sm:$0xff]  }
 0x184   : > { %1900 = vmatprep.subr.bf16.mxu1 %v896_v59  ;;  %1926 = vmatprep.subr.bf16.mxu0 %v1088_v57  ;;  %v1285_v14 = vpack.c.bf16 %v2057_v6, %v2056_v7 }
 0x185   : > { %v2347_v61 = vpop.permute.xlu0 %2064 }
 0x186   : > { %v2067_v51 = vunpack.i.h.bf16 %v2347_v61  ;;  %v2066_v53 = vunpack.i.l.bf16 %v2347_v61  ;;  %v2099_v61 = vld [vmem:[%s2261_s9 + $0x58] sm:$0xff]  }
 0x187   : > { %1901 = vmatpush3.bf16.msra.mxu1 %v896_v59  ;;  %1927 = vmatpush3.bf16.msra.mxu0 %v1088_v57 }
 0x188   : > { %1902 = vmatprep.subr.bf16.mxu1 %v895_v63  ;;  %1928 = vmatprep.subr.bf16.mxu0 %v1087_v0 }
 0x189   : > { %v2353_v1 = vpop.permute.xlu0 %801 }
 0x18a   : > { %v998_v4 = vadd.f32 %v2353_v1, %v2242_v32  ;;  %v997_v5 = vadd.f32 %v2353_v1, %v2237_v30  ;;  %v1191_v10 = vadd.f32 %v2353_v1, %v2266_v41  ;;  %v1190_v11 = vadd.f32 %v2353_v1, %v2254_v38  ;;  %v2060_v41 = vpop.permute.xlu1 %2059 }
 0x18b   : > { %1903 = vmatpush3.bf16.msra.mxu1 %v895_v63  ;;  %1929 = vmatpush3.bf16.msra.mxu0 %v1087_v0  ;;  %v1383_v20 = vadd.f32 %v2353_v1, %v2286_v50  ;;  %v999_v23 = vadd.f32 %v2233_v28, %v2353_v1  ;;  %v892_v38 = vpack.c.bf16 %v2242_v32, %v2237_v30  ;;  %v2062_v29 = vunpack.i.h.bf16 %v2060_v41  ;;  %v2098_v32 = vld [vmem:[%s2261_s9 + $0x50] sm:$0xff]  }
 0x18c   : > { %1904 = vmatprep.subr.bf16.mxu1 %v894_v2  ;;  %1930 = vmatprep.subr.bf16.mxu0 %v1086_v3  ;;  %v1006_v8 = vmax.f32 %v998_v4, 0.0  ;;  %v1005_v9 = vmax.f32 %v997_v5, 0.0  ;;  %v1199_v15 = vmax.f32 %v1191_v10, 0.0  ;;  %v1198_v16 = vmax.f32 %v1190_v11, 0.0  ;;  %v2101_v10 = vld [vmem:[%s2261_s9 + $0x38] sm:$0xff]  }
 0x18d   : > { %v2061_v39 = vunpack.i.l.bf16 %v2060_v41  ;;  %v1391_v45 = vmax.f32 %v1383_v20, 0.0  ;;  %v1192_v28 = vadd.f32 %v2252_v37, %v2353_v1  ;;  %v1007_v47 = vmax.f32 %v999_v23, 0.0 }
 0x18e   : > { %1023 = vrot.lane.b32.xlu0 %v1006_v8, %s2115_s12  ;;  %1021 = vrot.lane.b32.xlu1 %v1005_v9, %s2115_s12  ;;  %v1384_v30 = vadd.f32 %v2353_v1, %v2296_v54  ;;  %v2070_v57 = vpop.permute.xlu1 %2069  ;;  %v1385_v59 = vadd.f32 %v2281_v48, %v2353_v1  ;;  %v1000_v0 = vadd.f32 %v2240_v31, %v2353_v1  ;;  %v2102_v9 = vld [vmem:[%s2261_s9 + $0x60] sm:$0xff]  }
 0x18f   : > { %1905 = vmatpush3.bf16.msra.mxu1 %v894_v2  ;;  %1931 = vmatpush3.bf16.msra.mxu0 %v1086_v3  ;;  %v1284_v55 = vpack.c.bf16 %v2062_v29, %v2061_v39  ;;  %v1200_v37 = vmax.f32 %v1192_v28, 0.0  ;;  %v2100_v2 = vld [vmem:[%s2261_s9 + $0x30] sm:$0xff]   ;;  %v1283_v3 = vpack.c.bf16 %v2067_v51, %v2066_v53  ;;  %v2072_v4 = vunpack.i.h.bf16 %v2070_v57 }
 0x190   : > { %1906 = vmatprep.subr.bf16.mxu1 %v893_v12  ;;  %1932 = vmatprep.subr.bf16.mxu0 %v1085_v13  ;;  %v1392_v63 = vmax.f32 %v1384_v30, 0.0  ;;  %v2071_v5 = vunpack.i.l.bf16 %v2070_v57  ;;  %v1393_v6 = vmax.f32 %v1385_v59, 0.0  ;;  %v1001_v7 = vadd.f32 %v2353_v1, %v2246_v34 }
 0x191   : > { %v1008_v31 = vmax.f32 %v1000_v0, 0.0  ;;  %v1193_v8 = vadd.f32 %v2264_v40, %v2353_v1  ;;  %v1194_v34 = vadd.f32 %v2353_v1, %v2270_v43  ;;  %v1386_v40 = vadd.f32 %v2291_v52, %v2353_v1 }
 0x192   : > { %1216 = vrot.lane.b32.xlu0 %v1199_v15, %s2115_s12  ;;  %1214 = vrot.lane.b32.xlu1 %v1198_v16, %s2115_s12  ;;  %v1282_v11 = vpack.c.bf16 %v2072_v4, %v2071_v5  ;;  %v1281_v15 = vpack.c.bf16 %v2311_v60, %v2301_v56  ;;  %v1003_v43 = vadd.f32 %v2244_v33, %v2353_v1 }
 0x193   : > { %1907 = vmatpush3.bf16.msra.mxu1 %v893_v12  ;;  %1933 = vmatpush3.bf16.msra.mxu0 %v1085_v13  ;;  %v1009_v12 = vmax.f32 %v1001_v7, 0.0  ;;  %v1201_v13 = vmax.f32 %v1193_v8, 0.0  ;;  %v1202_v16 = vmax.f32 %v1194_v34, 0.0  ;;  %v1394_v20 = vmax.f32 %v1386_v40, 0.0 }
 0x194   : > { %1908 = vmatprep.subr.bf16.mxu1 %v892_v38  ;;  %1942 = vmatprep.subr.bf16.mxu0 %v1285_v14  ;;  %v1002_v23 = vadd.f32 %v2353_v1, %v2250_v36  ;;  %v1011_v41 = vmax.f32 %v1003_v43, 0.0  ;;  %v1196_v33 = vadd.f32 %v2268_v42, %v2353_v1  ;;  %v1195_v36 = vadd.f32 %v2353_v1, %v2276_v46 }
 0x195   : > { %v1279_v29 = vpack.c.bf16 %v2291_v52, %v2281_v48  ;;  %v1004_v46 = vadd.f32 %v2248_v35, %v2353_v1  ;;  %v1278_v48 = vpack.c.bf16 %v2296_v54, %v2286_v50  ;;  %v1197_v35 = vadd.f32 %v2272_v44, %v2353_v1  ;;  %v2103_v50 = vld [vmem:[%s2261_s9 + $0x68] sm:$0xff]   ;;  %v2105_v44 = vld [vmem:[%s2261_s9 + $0x78] sm:$0xff]  }
 0x196   : > { %1935 = vmatmul.mubr.bf16.vlgmr.msra.gmra.mxu0 %v2095_v26  ;;  %1407 = vrot.lane.b32.xlu0 %v1391_v45, %s2115_s12  ;;  %v1010_v26 = vmax.f32 %v1002_v23, 0.0  ;;  %v1204_v39 = vmax.f32 %v1196_v33, 0.0  ;;  %v1389_v45 = vadd.f32 %v2301_v56, %v2353_v1  ;;  %v1203_v42 = vmax.f32 %v1195_v36, 0.0 }
 0x197   : > { %1025 = vrot.lane.b32.xlu1 %v1007_v47, %s2115_s12  ;;  %1909 = vmatpush3.bf16.msra.mxu1 %v892_v38  ;;  %v1280_v38 = vpack.c.bf16 %v2316_v62, %v2306_v58  ;;  %v1387_v56 = vadd.f32 %v2353_v1, %v2306_v58  ;;  %v1012_v28 = vmax.f32 %v1004_v46, 0.0  ;;  %v1390_v47 = vadd.f32 %v2311_v60, %v2353_v1 }
 0x198   : > { %1943 = vmatpush3.bf16.msra.mxu0 %v1285_v14  ;;  %1966 = vmatprep.subr.bf16.mxu1 %v1285_v14  ;;  %v1397_v52 = vmax.f32 %v1389_v45, 0.0  ;;  %v1205_v30 = vmax.f32 %v1197_v35, 0.0  ;;  %v1388_v58 = vadd.f32 %v2353_v1, %v2316_v62  ;;  %v804_v53 = vadd.f32 %v2353_v1, %v2210_v18 }
 0x199   : > { %1944 = vmatprep.subr.bf16.mxu0 %v1284_v55  ;;  %1938 = vmatprep.mubr.bf16.mxu0 %v2098_v32  ;;  %v1395_v54 = vmax.f32 %v1387_v56, 0.0  ;;  %v1398_v32 = vmax.f32 %v1390_v47, 0.0  ;;  %v807_v62 = vadd.f32 %v2212_v19, %v2353_v1  ;;  %v808_v18 = vadd.f32 %v2353_v1, %v2223_v24 }
 0x19a   : > { %1911 = vmatmul.mubr.bf16.vlgmr.msra.gmra.mxu1 %v2097_v49  ;;  %1218 = vrot.lane.b32.xlu0 %v1200_v37, %s2115_s12  ;;  %v805_v49 = vadd.f32 %v2353_v1, %v2216_v21  ;;  %v1396_v51 = vmax.f32 %v1388_v58, 0.0  ;;  %v806_v37 = vadd.f32 %v2208_v17, %v2353_v1  ;;  %v809_v19 = vadd.f32 %v2353_v1, %v2230_v27 }
 0x19b   : > { %1409 = vrot.lane.b32.xlu1 %v1392_v63, %s2115_s12  ;;  %1974 = vmatpush3.bf16.msra.mxu1 %v1285_v14  ;;  %v2104_v14 = vld [vmem:[%s2261_s9 + $0x70] sm:$0xff]   ;;  %v815_v21 = vmax.f32 %v807_v62, 0.0  ;;  %v816_v59 = vmax.f32 %v808_v18, 0.0  ;;  %v810_v63 = vadd.f32 %v2219_v22, %v2353_v1  ;;  %v811_v24 = vadd.f32 %v2226_v25, %v2353_v1 }
 0x19c   : > { %1945 = vmatpush3.bf16.msra.mxu0 %v1284_v55  ;;  %1967 = vmatprep.subr.bf16.mxu1 %v1284_v55  ;;  %v813_v60 = vmax.f32 %v805_v49, 0.0  ;;  %v814_v57 = vmax.f32 %v806_v37, 0.0  ;;  %v817_v17 = vmax.f32 %v809_v19, 0.0 }
 0x19d   : > { %1946 = vmatprep.subr.bf16.mxu0 %v1283_v3  ;;  %1914 = vmatprep.mubr.bf16.mxu1 %v2100_v2  ;;  %v818_v0 = vmax.f32 %v810_v63, 0.0  ;;  %v819_v2 = vmax.f32 %v811_v24, 0.0 }
 0x19e   : > { %1939 = vmatmul.mubr.bf16.gmra.mxu0 %v2099_v61  ;;  %1411 = vrot.lane.b32.xlu0 %v1393_v6, %s2115_s12 }
 0x19f   : > { %1027 = vrot.lane.b32.xlu1 %v1008_v31, %s2115_s12  ;;  %1975 = vmatpush3.bf16.msra.mxu1 %v1284_v55  ;;  %v812_v55 = vmax.f32 %v804_v53, 0.0 }
 0x1a0   : > { %1947 = vmatpush3.bf16.msra.mxu0 %v1283_v3  ;;  %1968 = vmatprep.subr.bf16.mxu1 %v1283_v3 }
 0x1a1   : > { %1948 = vmatprep.subr.bf16.mxu0 %v1282_v11  ;;  %1958 = vmatprep.mubr.bf16.mxu0 %v2102_v9  ;;  %v2500_v9 = vld [vmem:[%s2633_s3] ss:$0 sm:$0xff] }
 0x1a2   : > { %1915 = vmatmul.mubr.bf16.gmra.mxu1 %v2101_v10  ;;  %1029 = vrot.lane.b32.xlu0 %v1009_v12, %s2115_s12 }
 0x1a3   : > { %1220 = vrot.lane.b32.xlu1 %v1201_v13, %s2115_s12  ;;  %1976 = vmatpush3.bf16.msra.mxu1 %v1283_v3 }
 0x1a4   : > { %1949 = vmatpush3.bf16.msra.mxu0 %v1282_v11  ;;  %1969 = vmatprep.subr.bf16.mxu1 %v1282_v11 }
 0x1a5   : > { %1950 = vmatprep.subr.bf16.mxu0 %v1281_v15  ;;  %1962 = vmatprep.mubr.bf16.mxu1 %v2104_v14 }
 0x1a6   : > { %1222 = vrot.lane.b32.xlu0 %v1202_v16, %s2115_s12 }
 0x1a7   : > { %1413 = vrot.lane.b32.xlu1 %v1394_v20, %s2115_s12  ;;  %1977 = vmatpush3.bf16.msra.mxu1 %v1282_v11 }
 0x1a8   : > { %1951 = vmatpush3.bf16.msra.mxu0 %v1281_v15  ;;  %1970 = vmatprep.subr.bf16.mxu1 %v1281_v15 }
 0x1a9   : > { %1952 = vmatprep.subr.bf16.mxu0 %v1280_v38 }
 0x1aa   : > { %1033 = vrot.lane.b32.xlu0 %v1011_v41, %s2115_s12 }
 0x1ab   : > { %1031 = vrot.lane.b32.xlu1 %v1010_v26, %s2115_s12  ;;  %1978 = vmatpush3.bf16.msra.mxu1 %v1281_v15 }
 0x1ac   : > { %1953 = vmatpush3.bf16.msra.mxu0 %v1280_v38  ;;  %1971 = vmatprep.subr.bf16.mxu1 %v1280_v38 }
 0x1ad   : > { %1954 = vmatprep.subr.bf16.mxu0 %v1279_v29 }
 0x1ae   : > { %1226 = vrot.lane.b32.xlu0 %v1204_v39, %s2115_s12 }
 0x1af   : > { %1224 = vrot.lane.b32.xlu1 %v1203_v42, %s2115_s12  ;;  %1979 = vmatpush3.bf16.msra.mxu1 %v1280_v38 }
 0x1b0   : > { %1955 = vmatpush3.bf16.msra.mxu0 %v1279_v29  ;;  %1972 = vmatprep.subr.bf16.mxu1 %v1279_v29 }
 0x1b1   : > { %1956 = vmatprep.subr.bf16.mxu0 %v1278_v48 }
 0x1b2   : > { %1419 = vrot.lane.b32.xlu0 %v1397_v52, %s2115_s12 }
 0x1b3   : > { %1035 = vrot.lane.b32.xlu1 %v1012_v28, %s2115_s12  ;;  %1980 = vmatpush3.bf16.msra.mxu1 %v1279_v29 }
 0x1b4   : > { %1957 = vmatpush3.bf16.msra.mxu0 %v1278_v48  ;;  %1973 = vmatprep.subr.bf16.mxu1 %v1278_v48 }
 0x1b6   : > { %1415 = vrot.lane.b32.xlu0 %v1395_v54, %s2115_s12 }
 0x1b7   : > { %1228 = vrot.lane.b32.xlu1 %v1205_v30, %s2115_s12  ;;  %1959 = vmatmul.mubr.bf16.vlgmr.msra.gmra.mxu0 %v2103_v50 }
 0x1b8   : > { %1981 = vmatpush3.bf16.msra.mxu1 %v1278_v48 }
 0x1ba   : > { %1421 = vrot.lane.b32.xlu0 %v1398_v32, %s2115_s12 }
 0x1bb   : > { %1417 = vrot.lane.b32.xlu1 %v1396_v51, %s2115_s12  ;;  %1963 = vmatmul.mubr.bf16.vlgmr.msra.gmra.mxu1 %v2105_v44 }
 0x1be   : > { %830 = vrot.lane.b32.xlu0 %v813_v60, %s2115_s12 }
 0x1bf   : > { %828 = vrot.lane.b32.xlu1 %v812_v55, %s2115_s12 }
 0x1c2   : > { %834 = vrot.lane.b32.xlu0 %v815_v21, %s2115_s12 }
 0x1c3   : > { %832 = vrot.lane.b32.xlu1 %v814_v57, %s2115_s12 }
 0x1c7   : > { %836 = vrot.lane.b32.xlu1 %v816_v59, %s2115_s12 }
 0x1cb   : > { %838 = vrot.lane.b32.xlu1 %v817_v17, %s2115_s12 }
 0x1cf   : > { %840 = vrot.lane.b32.xlu1 %v818_v0, %s2115_s12 }
 0x1d3   : > { %842 = vrot.lane.b32.xlu1 %v819_v2, %s2115_s12 }
 0x200   : > { %v1024_v4 = vpop.permute.xlu0 %1023  ;;  %v1022_v7 = vpop.permute.xlu1 %1021 }
 0x204   : > { %v1217_v22 = vpop.permute.xlu0 %1216  ;;  %v1215_v1 = vpop.permute.xlu1 %1214 }
 0x208   : > { %v2493_v25 = vpop.permute.xlu0 %1407 }
 0x209   : > { %v1026_v40 = vpop.permute.xlu1 %1025 }
 0x20c   : > { %v1219_v11 = vpop.permute.xlu0 %1218 }
 0x20d   : > { %v2511_v42 = vpop.permute.xlu1 %1409 }
 0x210   : > { %v2507_v41 = vpop.permute.xlu0 %1411 }
 0x211   : > { %v1028_v49 = vpop.permute.xlu1 %1027 }
 0x214   : > { %v1030_v54 = vpop.permute.xlu0 %1029 }
 0x215   : > { %v1221_v18 = vpop.permute.xlu1 %1220 }
 0x218   : > { %v1223_v21 = vpop.permute.xlu0 %1222 }
 0x21c   : > { %v1034_v24 = vpop.permute.xlu0 %1033 }
 0x236   : > { %v2481_v61 = vpop.f32.mrf.mxu1 }
 0x238   : > { %v2483_v27 = vpop.f32.mrf.mxu1 }
 0x23a   : > { %v2485_v3 = vpop.f32.mrf.mxu1 }
 0x23c   : > { %v2487_v5 = vpop.f32.mrf.mxu1 }
 0x23e   : > { %v2489_v6 = vpop.f32.mrf.mxu1 }
 0x240   : > { %v2491_v31 = vpop.f32.mrf.mxu1 }
 0x242   : > { %v2495_v8 = vpop.f32.mrf.mxu1 }
 0x244   : > { %v2503_v34 = vpop.f32.mrf.mxu1 }
 0x256   : > { %v1936_v10 = vpop.f32.mrf.mxu0 }
 0x257   : > { %v1160_v12 = vadd.f32 %v1936_v10, %v2500_v9  ;;  %v1414_v10 = vpop.permute.xlu1 %1413 }
 0x258   : > { %v1151_v13 = vpop.f32.mrf.mxu0 }
 0x259   : > { %v1184_v14 = vmax.f32 %v1160_v12, 0.0  ;;  %v1152_v23 = vadd.f32 %v2500_v9, %v1151_v13 }
 0x25a   : > { %v1912_v15 = vpop.f32.mrf.mxu1  ;;  %v1937_v16 = vpop.f32.mrf.mxu0 }
 0x25b   : > { %v1240_v43 = vadd.f32 %v1219_v11, %v1184_v14  ;;  %v967_v20 = vadd.f32 %v1912_v15, %v2500_v9  ;;  %v1182_v46 = vmax.f32 %v1152_v23, 0.0  ;;  %v1163_v47 = vadd.f32 %v1937_v16, %v2500_v9  ;;  %v1227_v14 = vpop.permute.xlu0 %1226 }
 0x25c   : > { %v958_v38 = vpop.f32.mrf.mxu1  ;;  %v1154_v36 = vpop.f32.mrf.mxu0 }
 0x25d   : > { %v991_v33 = vmax.f32 %v967_v20, 0.0  ;;  %v959_v26 = vadd.f32 %v2500_v9, %v958_v38  ;;  %1483 = vrot.lane.b32.xlu0 %v1240_v43, %s2115_s12  ;;  %v1155_v56 = vadd.f32 %v2500_v9, %v1154_v36  ;;  %v1238_v30 = vadd.f32 %v1215_v1, %v1182_v46 }
 0x25e   : > { %v1913_v29 = vpop.f32.mrf.mxu1  ;;  %v1185_v53 = vmax.f32 %v1163_v47, 0.0  ;;  %v1940_v55 = vpop.f32.mrf.mxu0 }
 0x25f   : > { %v1047_v39 = vadd.f32 %v1026_v40, %v991_v33  ;;  %v989_v45 = vmax.f32 %v959_v26, 0.0  ;;  %v970_v28 = vadd.f32 %v1913_v29, %v2500_v9  ;;  %v1183_v58 = vmax.f32 %v1155_v56, 0.0  ;;  %v1032_v33 = vpop.permute.xlu1 %1031  ;;  %v1420_v29 = vpop.permute.xlu0 %1419 }
 0x260   : > { %v961_v48 = vpop.f32.mrf.mxu1  ;;  %v1241_v59 = vadd.f32 %v1221_v18, %v1185_v53  ;;  %v1167_v19 = vpop.f32.mrf.mxu0  ;;  %v1176_v47 = vadd.f32 %v1940_v55, %v2500_v9 }
 0x261   : > { %v1045_v52 = vadd.f32 %v1022_v7, %v989_v45  ;;  %v962_v35 = vadd.f32 %v2500_v9, %v961_v48  ;;  %1451 = vrot.lane.b32.xlu1 %v1047_v39, %s2116_s15  ;;  %v992_v44 = vmax.f32 %v970_v28, 0.0  ;;  %v1239_v60 = vadd.f32 %v1217_v22, %v1183_v58 }
 0x262   : > { %v1916_v51 = vpop.f32.mrf.mxu1  ;;  %v1168_v2 = vadd.f32 %v2500_v9, %v1167_v19  ;;  %v2527_v22 = vpop.f32.mrf.mxu0 }
 0x263   : > { %v990_v50 = vmax.f32 %v962_v35, 0.0  ;;  %1447 = vrot.lane.b32.xlu0 %v1045_v52, %s2116_s15  ;;  %v1048_v62 = vadd.f32 %v1028_v49, %v992_v44  ;;  %v983_v37 = vadd.f32 %v1916_v51, %v2500_v9  ;;  %v1416_v44 = vpop.permute.xlu0 %1415 }
 0x264   : > { %v974_v57 = vpop.f32.mrf.mxu1  ;;  %v1186_v11 = vmax.f32 %v1168_v2, 0.0  ;;  %v1170_v13 = vpop.f32.mrf.mxu0 }
 0x265   : > { %v1046_v32 = vadd.f32 %v1024_v4, %v990_v50  ;;  %v995_v17 = vmax.f32 %v983_v37, 0.0  ;;  %v975_v63 = vadd.f32 %v2500_v9, %v974_v57  ;;  %v1171_v20 = vadd.f32 %v2500_v9, %v1170_v13  ;;  %v1225_v50 = vpop.permute.xlu1 %1224 }
 0x266   : > { %v1917_v0 = vpop.f32.mrf.mxu1  ;;  %v1242_v43 = vadd.f32 %v1223_v21, %v1186_v11 }
 0x267   : > { %1449 = vrot.lane.b32.xlu1 %v1046_v32, %s2116_s15  ;;  %1479 = vrot.lane.b32.xlu0 %v1238_v30, %s2115_s12  ;;  %v1051_v4 = vadd.f32 %v1034_v24, %v995_v17  ;;  %v993_v7 = vmax.f32 %v975_v63, 0.0  ;;  %v1187_v46 = vmax.f32 %v1171_v20, 0.0  ;;  %v986_v55 = vadd.f32 %v1917_v0, %v2500_v9 }
 0x268   : > { %v977_v1 = vpop.f32.mrf.mxu1 }
 0x269   : > { %v1049_v12 = vadd.f32 %v1030_v54, %v993_v7  ;;  %v978_v40 = vadd.f32 %v2500_v9, %v977_v1  ;;  %v1243_v30 = vadd.f32 %v1225_v50, %v1187_v46  ;;  %v1036_v21 = vpop.permute.xlu1 %1035  ;;  %v996_v24 = vmax.f32 %v986_v55, 0.0 }
 0x26a   : > { %v1179_v1 = vadd.f32 %v2527_v22, %v2500_v9 }
 0x26b   : > { %1481 = vrot.lane.b32.xlu1 %v1239_v60, %s2115_s12  ;;  %1453 = vrot.lane.b32.xlu0 %v1048_v62, %s2116_s15  ;;  %v994_v23 = vmax.f32 %v978_v40, 0.0  ;;  %v1188_v60 = vmax.f32 %v1176_v47, 0.0  ;;  %v779_v47 = vadd.f32 %v2500_v9, %v2491_v31 }
 0x26c   : > { %v1189_v40 = vmax.f32 %v1179_v1, 0.0 }
 0x26d   : > { %v1050_v48 = vadd.f32 %v1032_v33, %v994_v23  ;;  %v1244_v19 = vadd.f32 %v1227_v14, %v1188_v60  ;;  %v797_v31 = vmax.f32 %v779_v47, 0.0 }
 0x26f   : > { %1485 = vrot.lane.b32.xlu0 %v1241_v59, %s2115_s12 }
 0x273   : > { %1459 = vrot.lane.b32.xlu0 %v1051_v4, %s2116_s15  ;;  %v1229_v4 = vpop.permute.xlu1 %1228 }
 0x277   : > { %v1960_v15 = vpop.f32.mrf.mxu0  ;;  %1455 = vrot.lane.b32.xlu0 %v1049_v12, %s2116_s15  ;;  %v1422_v12 = vpop.permute.xlu0 %1421 }
 0x278   : > { %v1353_v16 = vadd.f32 %v1960_v15, %v2500_v9  ;;  %v1245_v15 = vadd.f32 %v1229_v4, %v1189_v40 }
 0x279   : > { %v1344_v38 = vpop.f32.mrf.mxu0 }
 0x27a   : > { %v1377_v26 = vmax.f32 %v1353_v16, 0.0  ;;  %v1345_v52 = vadd.f32 %v2500_v9, %v1344_v38 }
 0x27b   : > { %v1964_v36 = vpop.f32.mrf.mxu1  ;;  %1487 = vrot.lane.b32.xlu0 %v1242_v43, %s2115_s12  ;;  %v1961_v45 = vpop.f32.mrf.mxu0 }
 0x27c   : > { %v1433_v39 = vadd.f32 %v2507_v41, %v1377_v26  ;;  %v1356_v28 = vadd.f32 %v1961_v45, %v2500_v9  ;;  %v1375_v41 = vmax.f32 %v1345_v52, 0.0  ;;  %v1369_v37 = vadd.f32 %v1964_v36, %v2500_v9  ;;  %v831_v43 = vpop.permute.xlu0 %830 }
 0x27d   : > { %v1360_v56 = vpop.f32.mrf.mxu1  ;;  %v1347_v54 = vpop.f32.mrf.mxu0  ;;  %v771_v52 = vadd.f32 %v2481_v61, %v2500_v9  ;;  %v763_v61 = vadd.f32 %v2500_v9, %v2483_v27 }
 0x27e   : > { %1515 = vrot.lane.b32.xlu1 %v1433_v39, %s2114_s30  ;;  %v1361_v35 = vadd.f32 %v2500_v9, %v1360_v56  ;;  %v1378_v32 = vmax.f32 %v1356_v28, 0.0  ;;  %v1348_v49 = vadd.f32 %v2500_v9, %v1347_v54  ;;  %v1431_v62 = vadd.f32 %v2493_v25, %v1375_v41 }
 0x27f   : > { %1457 = vrot.lane.b32.xlu0 %v1050_v48, %s2116_s15  ;;  %v1965_v53 = vpop.f32.mrf.mxu1  ;;  %v1381_v17 = vmax.f32 %v1369_v37, 0.0  ;;  %v793_v60 = vmax.f32 %v763_v61, 0.0 }
 0x280   : > { %v1379_v58 = vmax.f32 %v1361_v35, 0.0  ;;  %v1434_v57 = vadd.f32 %v1414_v10, %v1378_v32  ;;  %v1376_v18 = vmax.f32 %v1348_v49, 0.0  ;;  %v1372_v63 = vadd.f32 %v1965_v53, %v2500_v9  ;;  %v835_v23 = vpop.permute.xlu0 %834 }
 0x281   : > { %v1363_v59 = vpop.f32.mrf.mxu1  ;;  %v1437_v0 = vadd.f32 %v1420_v29, %v1381_v17  ;;  %v1052_v10 = vadd.f32 %v1036_v21, %v996_v24  ;;  %v795_v35 = vmax.f32 %v771_v52, 0.0 }
 0x282   : > { %v1435_v51 = vadd.f32 %v1416_v44, %v1379_v58  ;;  %v1432_v25 = vadd.f32 %v2511_v42, %v1376_v18  ;;  %v1364_v2 = vadd.f32 %v2500_v9, %v1363_v59  ;;  %v1382_v7 = vmax.f32 %v1372_v63, 0.0  ;;  %v1418_v42 = vpop.permute.xlu1 %1417 }
 0x283   : > { %1489 = vrot.lane.b32.xlu0 %v1243_v30, %s2115_s12  ;;  %v774_v44 = vadd.f32 %v2485_v3, %v2500_v9  ;;  %v787_v3 = vadd.f32 %v2489_v6, %v2500_v9 }
 0x284   : > { %1519 = vrot.lane.b32.xlu1 %v1435_v51, %s2114_s30  ;;  %v1380_v11 = vmax.f32 %v1364_v2, 0.0  ;;  %v1438_v13 = vadd.f32 %v1422_v12, %v1382_v7 }
 0x285   : > { %v796_v27 = vmax.f32 %v774_v44, 0.0  ;;  %v799_v2 = vmax.f32 %v787_v3, 0.0 }
 0x286   : > { %v1436_v14 = vadd.f32 %v1418_v42, %v1380_v11  ;;  %v829_v22 = vpop.permute.xlu1 %828 }
 0x287   : > { %1511 = vrot.lane.b32.xlu0 %v1431_v62, %s2114_s30  ;;  %v766_v62 = vadd.f32 %v2500_v9, %v2487_v5  ;;  %v852_v55 = vadd.f32 %v829_v22, %v793_v60 }
 0x288   : > { %1517 = vrot.lane.b32.xlu1 %v1434_v57, %s2114_s30 }
 0x289   : > { %v794_v17 = vmax.f32 %v766_v62, 0.0 }
 0x28a   : > { %v833_v16 = vpop.permute.xlu1 %832 }
 0x28b   : > { %1491 = vrot.lane.b32.xlu0 %v1244_v19, %s2115_s12  ;;  %v854_v54 = vadd.f32 %v833_v16, %v795_v35  ;;  %v855_v19 = vadd.f32 %v835_v23, %v796_v27  ;;  %v853_v1 = vadd.f32 %v831_v43, %v794_v17 }
 0x28c   : > { %1513 = vrot.lane.b32.xlu1 %v1432_v25, %s2114_s30 }
 0x28e   : > { %v837_v20 = vpop.permute.xlu1 %836 }
 0x28f   : > { %1523 = vrot.lane.b32.xlu0 %v1437_v0, %s2114_s30  ;;  %v856_v37 = vadd.f32 %v837_v20, %v797_v31 }
 0x290   : > { %1461 = vrot.lane.b32.xlu1 %v1052_v10, %s2116_s15  ;;  %v782_v10 = vadd.f32 %v2500_v9, %v2503_v34 }
 0x292   : > { %v2562_v33 = vpop.permute.xlu1 %838  ;;  %v798_v22 = vmax.f32 %v782_v10, 0.0 }
 0x293   : > { %1525 = vrot.lane.b32.xlu0 %v1438_v13, %s2114_s30 }
 0x294   : > { %1521 = vrot.lane.b32.xlu1 %v1436_v14, %s2114_s30 }
 0x296   : > { %v841_v36 = vpop.permute.xlu1 %840 }
 0x297   : > { %v858_v13 = vadd.f32 %v841_v36, %v799_v2 }
 0x298   : > { %1493 = vrot.lane.b32.xlu1 %v1245_v15, %s2115_s12  ;;  %v790_v15 = vadd.f32 %v2495_v8, %v2500_v9  ;;  %v857_v8 = vadd.f32 %v2562_v33, %v798_v22 }
 0x29a   : > { %v2564_v45 = vpop.permute.xlu1 %842  ;;  %v800_v9 = vmax.f32 %v790_v15, 0.0 }
 0x29c   : > { %v859_v61 = vadd.f32 %v2564_v45, %v800_v9 }
 0x2cf   : > { %v1484_v38 = vpop.permute.xlu0 %1483 }
 0x2d3   : > { %v1452_v48 = vpop.permute.xlu1 %1451 }
 0x2d4   : > { %v1538_v41 = vsel %vm1535_vm1, %v854_v54, %v1452_v48 }
 0x2d5   : > { %v1448_v26 = vpop.permute.xlu0 %1447  ;;  %v1547_v32 = vsel %vm1544_vm2, %v1538_v41, %v1484_v38 }
 0x2d6   : > { %v1536_v63 = vsel %vm1535_vm1, %v852_v55, %v1448_v26 }
 0x2d9   : > { %v1480_v29 = vpop.permute.xlu0 %1479  ;;  %v1450_v28 = vpop.permute.xlu1 %1449 }
 0x2da   : > { %v1545_v5 = vsel %vm1544_vm2, %v1536_v63, %v1480_v29  ;;  %v1537_v42 = vsel %vm1535_vm1, %v853_v1, %v1450_v28 }
 0x2dd   : > { %v1454_v39 = vpop.permute.xlu0 %1453  ;;  %v1482_v30 = vpop.permute.xlu1 %1481 }
 0x2de   : > { %v1539_v6 = vsel %vm1535_vm1, %v855_v19, %v1454_v39  ;;  %v1546_v40 = vsel %vm1544_vm2, %v1537_v42, %v1482_v30 }
 0x2e1   : > { %v1486_v46 = vpop.permute.xlu0 %1485 }
 0x2e2   : > { %v1548_v0 = vsel %vm1544_vm2, %v1539_v6, %v1486_v46 }
 0x2e5   : > { %v1460_v56 = vpop.permute.xlu0 %1459 }
 0x2e6   : > { %v1542_v16 = vsel %vm1535_vm1, %v858_v13, %v1460_v56 }
 0x2e9   : > { %v1456_v50 = vpop.permute.xlu0 %1455 }
 0x2ea   : > { %v1540_v57 = vsel %vm1535_vm1, %v856_v37, %v1456_v50 }
 0x2ed   : > { %v1488_v58 = vpop.permute.xlu0 %1487 }
 0x2ee   : > { %v1549_v18 = vsel %vm1544_vm2, %v1540_v57, %v1488_v58 }
 0x2f0   : > { %v1516_v49 = vpop.permute.xlu1 %1515 }
 0x2f1   : > { %v1556_v51 = vsel %vm1553_vm3, %v1547_v32, %v1516_v49  ;;  %v1458_v53 = vpop.permute.xlu0 %1457 }
 0x2f2   : > { %1564 = vst [vmem:[%s2577_s20 + $0x10] sm:$0xff] %v1556_v51  ;;  %v1585_v29 = vmul.f32 %v1556_v51, %v1556_v51  ;;  %v1541_v35 = vsel %vm1535_vm1, %v857_v8, %v1458_v53 }
 0x2f5   : > { %v1490_v21 = vpop.permute.xlu0 %1489 }
 0x2f6   : > { %v1520_v59 = vpop.permute.xlu1 %1519  ;;  %v1550_v54 = vsel %vm1544_vm2, %v1541_v35, %v1490_v21 }
 0x2f7   : > { %v1558_v24 = vsel %vm1553_vm3, %v1549_v18, %v1520_v59 }
 0x2f8   : > { %1566 = vst [vmem:[%s2577_s20 + $0x20] sm:$0xff] %v1558_v24  ;;  %v1587_v50 = vmul.f32 %v1558_v24, %v1558_v24 }
 0x2f9   : > { %v1512_v25 = vpop.permute.xlu0 %1511 }
 0x2fa   : > { %v1554_v4 = vsel %vm1553_vm3, %v1545_v5, %v1512_v25  ;;  %v1518_v7 = vpop.permute.xlu1 %1517 }
 0x2fb   : > { %1562 = vst [vmem:[%s2577_s20] sm:$0xff] %v1554_v4  ;;  %v1557_v11 = vsel %vm1553_vm3, %v1548_v0, %v1518_v7  ;;  %v1583_v34 = vmul.f32 %v1554_v4, %v1554_v4 }
 0x2fc   : > { %1565 = vst [vmem:[%s2577_s20 + $0x18] sm:$0xff] %v1557_v11  ;;  %v1586_v52 = vmul.f32 %v1557_v11, %v1557_v11 }
 0x2fd   : > { %v1492_v12 = vpop.permute.xlu0 %1491 }
 0x2fe   : > { %v1514_v14 = vpop.permute.xlu1 %1513  ;;  %v1551_v38 = vsel %vm1544_vm2, %v1542_v16, %v1492_v12 }
 0x2ff   : > { %v1555_v43 = vsel %vm1553_vm3, %v1546_v40, %v1514_v14 }
 0x300   : > { %1563 = vst [vmem:[%s2577_s20 + $0x8] sm:$0xff] %v1555_v43  ;;  %v1570_v20 = vadd.f32 %v1555_v43, %v1554_v4  ;;  %v1584_v23 = vmul.f32 %v1555_v43, %v1555_v43 }
 0x301   : > { %v1524_v26 = vpop.permute.xlu0 %1523 }
 0x302   : > { %v1560_v36 = vsel %vm1553_vm3, %v1551_v38, %v1524_v26  ;;  %v1571_v39 = vadd.f32 %v1570_v20, %v1556_v51  ;;  %v1591_v46 = vadd.f32 %v1584_v23, %v1583_v34  ;;  %v1462_v48 = vpop.permute.xlu1 %1461 }
 0x303   : > { %1568 = vst [vmem:[%s2577_s20 + $0x30] sm:$0xff] %v1560_v36  ;;  %v1543_v32 = vsel %vm1535_vm1, %v859_v61, %v1462_v48  ;;  %v1589_v49 = vmul.f32 %v1560_v36, %v1560_v36 }
 0x304   : > { %v1592_v56 = vadd.f32 %v1591_v46, %v1585_v29  ;;  %v1572_v28 = vadd.f32 %v1571_v39, %v1557_v11 }
 0x305   : > { %v1526_v27 = vpop.permute.xlu0 %1525 }
 0x306   : > { %v1522_v47 = vpop.permute.xlu1 %1521  ;;  %v1573_v30 = vadd.f32 %v1572_v28, %v1558_v24  ;;  %v1593_v41 = vadd.f32 %v1592_v56, %v1586_v52 }
 0x307   : > { %v1559_v58 = vsel %vm1553_vm3, %v1550_v54, %v1522_v47 }
 0x308   : > { %1567 = vst [vmem:[%s2577_s20 + $0x28] sm:$0xff] %v1559_v58  ;;  %v1574_v44 = vadd.f32 %v1573_v30, %v1559_v58  ;;  %v1588_v33 = vmul.f32 %v1559_v58, %v1559_v58  ;;  %v1594_v31 = vadd.f32 %v1593_v41, %v1587_v50 }
 0x30a   : > { %v1575_v51 = vadd.f32 %v1574_v44, %v1560_v36  ;;  %v1595_v53 = vadd.f32 %v1594_v31, %v1588_v33  ;;  %v1494_v60 = vpop.permute.xlu1 %1493 }
 0x30b   : > { %v1552_v62 = vsel %vm1544_vm2, %v1543_v32, %v1494_v60 }
 0x30c   : > { %v1596_v37 = vadd.f32 %v1595_v53, %v1589_v49  ;;  %v1561_v21 = vsel %vm1553_vm3, %v1552_v62, %v1526_v27 }
 0x30d   : > { %1569 = vst [vmem:[%s2577_s20 + $0x38] sm:$0xff] %v1561_v21  ;;  %v1576_v45 = vadd.f32 %v1575_v51, %v1561_v21  ;;  %v1590_v55 = vmul.f32 %v1561_v21, %v1561_v21 }
 0x30f   : > { %v1577_v3 = vrot.slane %v1576_v45, 4  ;;  %v1597_v57 = vadd.f32 %v1596_v37, %v1590_v55 }
 0x311   : > { %v1578_v18 = vadd.f32 %v1577_v3, %v1576_v45  ;;  %v1598_v59 = vrot.slane %v1597_v57, 4 }
 0x313   : > { %v1579_v19 = vrot.slane %v1578_v18, 2  ;;  %v1599_v17 = vadd.f32 %v1598_v59, %v1597_v57 }
 0x315   : > { %v1580_v63 = vadd.f32 %v1579_v19, %v1578_v18  ;;  %v1600_v24 = vrot.slane %v1599_v17, 2 }
 0x317   : > { %v1581_v5 = vrot.slane %v1580_v63, 1  ;;  %v1601_v25 = vadd.f32 %v1600_v24, %v1599_v17 }
 0x319   : > { %v1602_v2 = vrot.slane %v1601_v25, 1  ;;  %v1582_v6 = vadd.f32 %v1581_v5, %v1580_v63 }
 0x31b   : > { %v1603_v4 = vadd.f32 %v1602_v2, %v1601_v25 }
 0x31d   : > { %v1605_v0 = vsel %vm1604_vm4, %v1582_v6, %v1603_v4 }
 0x31e   : > { %1606 = vst [vmem:[%s287_s26] sm:$0x3] %v1605_v0 }
 0x31f PF: > { %s17_s21 = sadd.s32 1, %s2112_s21  }
 0x320   : > { %p14_p6 = scmp.ge.s32.totalorder %s17_s21, 4  }
 0x322   :  { %16 = sbr.rel (!%p14_p6) target bundleno = 1 (0x1), region = 85 }

</bundles_post_ra>
